<compile_context>
chip_gen: v7x
topology: tpu7x:2x2x1
jax: 0.10.0
libtpu: 0.0.40
codegen_flags: <defaults>
</compile_context>

<pallas_src>
import functools
import math

import jax
import jax.numpy as jnp
from jax.experimental import pallas as pl
from jax.experimental.pallas import tpu as pltpu


# ----------------------------------------------------------------------------
# Fused kernel: wavefront LSTM stack + MLP head, everything resident in VMEM.
# PyTorch gate order: i, f, g, o. Combined bias b = b_ih + b_hh.
# ----------------------------------------------------------------------------
def _fused_lstm_mlp_kernel(num_layers, B, T, H, x_ref, wih0_ref, b0_ref, *refs):
    L = num_layers
    H4 = 4 * H
    wcat_refs = refs[:L]                       # layer l: [W_hh_l | W_ih_{l+1}] (last: W_hh only)
    bias_refs = refs[L:2 * L - 1]              # combined biases of layers 1..L-1
    w1_ref, b1_ref, w2row_ref, b2_ref, out_ref = refs[2 * L - 1:]

    # Hoisted layer-0 input projection for ALL timesteps (time-major rows: r = t*B + b),
    # bias folded in once. One MXU matmul of M = T*B rows instead of B rows per step.
    gx0 = jnp.dot(x_ref[...], wih0_ref[...],
                  preferred_element_type=jnp.float32) + b0_ref[...]      # (T*B, 4H)

    wcats = [wcat_refs[l][...] for l in range(L)]
    biases = [bias_refs[l][...] for l in range(L - 1)]

    def lstm_cell(gates, c_prev):
        # Full-width nonlinearities (2 EUP ops), slices taken off the results; the
        # 4H = 128 gates occupy exactly one vreg lane-wise.
        sig = jax.nn.sigmoid(gates)
        tg = jnp.tanh(gates)
        i_g = sig[:, 0 * H:1 * H]
        f_g = sig[:, 1 * H:2 * H]
        g_g = tg[:, 2 * H:3 * H]
        o_g = sig[:, 3 * H:4 * H]
        c_new = i_g * g_g if c_prev is None else f_g * c_prev + i_g * g_g
        h_new = o_g * jnp.tanh(c_new)
        return h_new, c_new

    h = [None] * L        # latest hidden state per layer
    c = [None] * L        # latest cell state per layer
    hproj = [None] * L    # latest h_l @ wcat_l (own W_hh | next layer's W_ih)

    # Wavefront: step s processes layer l at timestep t = s - l (fully unrolled).
    for s in range(T + L - 1):
        hproj_prev = list(hproj)              # projections of the previous step's h's
        for l in range(L):
            t = s - l
            if not (0 <= t < T):
                continue
            # Input contribution: hoisted x-projection for layer 0, otherwise the
            # W_ih half (lanes 4H:8H, an exact vreg boundary) of layer l-1's fused proj.
            if l == 0:
                g_in = gx0[t * B:(t + 1) * B, :]                        # bias included
            else:
                g_in = hproj_prev[l - 1][:, H4:2 * H4] + biases[l - 1]
            # Own recurrence: W_hh half (lanes 0:4H) of this layer's previous proj.
            # Skipped at t == 0 (zero initial h/c).
            if t == 0:
                h_new, c_new = lstm_cell(g_in, None)
            else:
                h_new, c_new = lstm_cell(g_in + hproj_prev[l][:, 0:H4], c[l])
            h[l] = h_new
            c[l] = c_new
            # One fused MXU push per fresh hidden state: own recurrence AND the next
            # layer's input projection. Skipped for the final h of the last layer
            # (its only consumer is the MLP head below).
            if not (l == L - 1 and t == T - 1):
                hproj[l] = jnp.dot(h_new, wcats[l],
                                   preferred_element_type=jnp.float32)

    # MLP head on the last layer's final hidden state.
    h_last = h[L - 1]                                                   # (B, H)
    z = jnp.maximum(
        jnp.dot(h_last, w1_ref[...], preferred_element_type=jnp.float32)
        + b1_ref[...], 0.0)                                             # (B, H//2)
    # fc2 has out_features = 1: VPU multiply + lane reduction instead of an N=1 MXU push.
    out_ref[...] = (jnp.sum(z * w2row_ref[...], axis=1, keepdims=True)
                    + b2_ref[...])                                      # (B, 1)


# ----------------------------------------------------------------------------
# Wrapper: one gridless pallas_call for the whole forward pass (all VMEM-resident).
# ----------------------------------------------------------------------------
def simple_lstm_forward(x_btd, params):
    # x_btd: (B, T, D) batch_first, like PyTorch.
    x = x_btd.astype(jnp.float32)
    B, T, D = x.shape
    layers = params["lstm_layers"]
    L = len(layers)
    H = layers[0][1].shape[0]

    # Time-major flattening: row r = t*B + b -> contiguous per-timestep row blocks.
    x2d = jnp.transpose(x, (1, 0, 2)).reshape(T * B, D)

    # Fused per-layer weights [W_hh_l | W_ih_{l+1}] so each fresh h_l needs exactly one
    # matmul per wavefront step (own recurrence + next layer's input projection).
    wcats = []
    for l in range(L):
        w_hh = layers[l][1]
        if l + 1 < L:
            wcats.append(jnp.concatenate([w_hh, layers[l + 1][0]], axis=1))  # (H, 8H)
        else:
            wcats.append(w_hh)                                               # (H, 4H)

    args = ([x2d, layers[0][0], layers[0][2]]          # x (time-major), W_ih_0, b_0
            + wcats
            + [layers[l][2] for l in range(1, L)]      # biases of layers 1..L-1
            + [params["w1"], params["b1"],
               params["w2"].reshape(1, -1),            # fc2 weight as a lane-major row
               params["b2"]])

    vmem = pl.BlockSpec(memory_space=pltpu.MemorySpace.VMEM)

    # Advisory cost estimate so XLA schedules around the tiny custom call.
    flops = 0
    d_in = D
    for _ in range(L):
        flops += 2 * B * T * d_in * 4 * H + 2 * B * T * H * 4 * H
        d_in = H
    flops += 2 * B * H * (H // 2) + 2 * B * (H // 2)
    transcendentals = L * B * T * (2 * 4 * H + H)
    bytes_accessed = int(sum(int(a.size) * 4 for a in args) + B * 4)

    out = pl.pallas_call(
        functools.partial(_fused_lstm_mlp_kernel, L, B, T, H),
        out_shape=jax.ShapeDtypeStruct((B, 1), jnp.float32),
        in_specs=[vmem] * len(args),
        out_specs=vmem,
        cost_estimate=pl.CostEstimate(flops=flops,
                                      transcendentals=transcendentals,
                                      bytes_accessed=bytes_accessed),
    )(*args)
    return jnp.squeeze(out)                                             # (B,)


# ----------------------------------------------------------------------------
# Deterministic parameter init (PyTorch-style uniform(-1/sqrt(H), 1/sqrt(H))).
# Weights pre-transposed to (in_features, out_features); LSTM biases combined.
# ----------------------------------------------------------------------------
def init_params(key, input_dim, hidden_dim, num_layers):
    H = hidden_dim
    bound = 1.0 / math.sqrt(H)
    layers = []
    for layer in range(num_layers):
        d_in = input_dim if layer == 0 else H
        key, k1, k2, k3, k4 = jax.random.split(key, 5)
        w_ih = jax.random.uniform(k1, (d_in, 4 * H), jnp.float32, -bound, bound)
        w_hh = jax.random.uniform(k2, (H, 4 * H), jnp.float32, -bound, bound)
        b_ih = jax.random.uniform(k3, (4 * H,), jnp.float32, -bound, bound)
        b_hh = jax.random.uniform(k4, (4 * H,), jnp.float32, -bound, bound)
        layers.append((w_ih, w_hh, (b_ih + b_hh).reshape(1, 4 * H)))
    key, k1, k2, k3, k4 = jax.random.split(key, 5)
    b1_bound = 1.0 / math.sqrt(H)
    b2_bound = 1.0 / math.sqrt(H // 2)
    return {
        "lstm_layers": layers,
        "w1": jax.random.uniform(k1, (H, H // 2), jnp.float32, -b1_bound, b1_bound),
        "b1": jax.random.uniform(k2, (1, H // 2), jnp.float32, -b1_bound, b1_bound),
        "w2": jax.random.uniform(k3, (H // 2, 1), jnp.float32, -b2_bound, b2_bound),
        "b2": jax.random.uniform(k4, (1, 1), jnp.float32, -b2_bound, b2_bound),
    }


# ----------------------------------------------------------------------------
# Pure-JAX reference for a correctness check.
# ----------------------------------------------------------------------------
def reference_forward(x_btd, params):
    x = jnp.transpose(x_btd, (1, 0, 2)).astype(jnp.float32)  # (T, B, D)
    for (w_ih, w_hh, b) in params["lstm_layers"]:
        H = w_hh.shape[0]
        B = x.shape[1]

        def step(carry, xt):
            h, c = carry
            g = xt @ w_ih + h @ w_hh + b
            i = jax.nn.sigmoid(g[:, 0 * H:1 * H])
            f = jax.nn.sigmoid(g[:, 1 * H:2 * H])
            gg = jnp.tanh(g[:, 2 * H:3 * H])
            o = jax.nn.sigmoid(g[:, 3 * H:4 * H])
            c = f * c + i * gg
            h = o * jnp.tanh(c)
            return (h, c), h

        init = (jnp.zeros((B, H), jnp.float32), jnp.zeros((B, H), jnp.float32))
        _, x = jax.lax.scan(step, init, x)
    h_last = x[-1]
    z = jnp.maximum(h_last @ params["w1"] + params["b1"], 0.0)
    return jnp.squeeze(z @ params["w2"] + params["b2"])


if __name__ == "__main__":
    # Small shapes consistent with the module's forward: (batch, seq, input_dim).
    B, T, D, H, L = 2, 8, 4, 32, 2

    key = jax.random.PRNGKey(0)
    kx, kp = jax.random.split(key)
    x = jax.random.normal(kx, (B, T, D), jnp.float32)
    params = init_params(kp, input_dim=D, hidden_dim=H, num_layers=L)

    out = simple_lstm_forward(x, params)
    out = jax.block_until_ready(out)

    ref = jax.block_until_ready(reference_forward(x, params))
    assert out.shape == (B,), out.shape
    assert jnp.allclose(out, ref, atol=1e-5, rtol=1e-5), (out, ref)

    print("KERNEL_OK")
</pallas_src>

<mosaic_0001>
module attributes {stable_mosaic.version = 11 : i64} {
  func.func @_fused_lstm_mlp_kernel(%arg0: memref<16x4xf32, #tpu.memory_space<vmem>>, %arg1: memref<4x128xf32, #tpu.memory_space<vmem>>, %arg2: memref<1x128xf32, #tpu.memory_space<vmem>>, %arg3: memref<32x256xf32, #tpu.memory_space<vmem>>, %arg4: memref<32x128xf32, #tpu.memory_space<vmem>>, %arg5: memref<1x128xf32, #tpu.memory_space<vmem>>, %arg6: memref<32x16xf32, #tpu.memory_space<vmem>>, %arg7: memref<1x16xf32, #tpu.memory_space<vmem>>, %arg8: memref<1x16xf32, #tpu.memory_space<vmem>>, %arg9: memref<1x1xf32, #tpu.memory_space<vmem>>, %arg10: memref<2x1xf32, #tpu.memory_space<vmem>>) attributes {dimension_semantics = [], scalar_prefetch = 0 : i64, scratch_operands = 0 : i64, tpu.core_type = #tpu.core_type<tc>} {
    %c0 = arith.constant 0 : index
    %c0_0 = arith.constant 0 : index
    %0 = vector.load %arg0[%c0, %c0_0] : memref<16x4xf32, #tpu.memory_space<vmem>>, vector<16x4xf32>
    %c0_1 = arith.constant 0 : index
    %c0_2 = arith.constant 0 : index
    %1 = vector.load %arg1[%c0_1, %c0_2] : memref<4x128xf32, #tpu.memory_space<vmem>>, vector<4x128xf32>
    %cst = arith.constant dense<0.000000e+00> : vector<16x128xf32>
    %2 = tpu.matmul %0, %1, %cst {dimension_numbers = #tpu.dot_dimension_numbers<[1], [0], [0], [1], [0, 0, 1, 1], [], []>} : vector<16x4xf32>, vector<4x128xf32>, vector<16x128xf32> -> vector<16x128xf32>
    %c0_3 = arith.constant 0 : index
    %c0_4 = arith.constant 0 : index
    %3 = vector.load %arg2[%c0_3, %c0_4] : memref<1x128xf32, #tpu.memory_space<vmem>>, vector<1x128xf32>
    %4 = vector.broadcast %3 : vector<1x128xf32> to vector<16x128xf32>
    %5 = arith.addf %2, %4 : vector<16x128xf32>
    %c0_5 = arith.constant 0 : index
    %c0_6 = arith.constant 0 : index
    %6 = vector.load %arg3[%c0_5, %c0_6] : memref<32x256xf32, #tpu.memory_space<vmem>>, vector<32x256xf32>
    %c0_7 = arith.constant 0 : index
    %c0_8 = arith.constant 0 : index
    %7 = vector.load %arg4[%c0_7, %c0_8] : memref<32x128xf32, #tpu.memory_space<vmem>>, vector<32x128xf32>
    %c0_9 = arith.constant 0 : index
    %c0_10 = arith.constant 0 : index
    %8 = vector.load %arg5[%c0_9, %c0_10] : memref<1x128xf32, #tpu.memory_space<vmem>>, vector<1x128xf32>
    %9 = vector.extract_strided_slice %5 {offsets = [0, 0], sizes = [2, 128], strides = [1, 1]} : vector<16x128xf32> to vector<2x128xf32>
    %10 = arith.negf %9 : vector<2x128xf32>
    %11 = math.exp %10 : vector<2x128xf32>
    %cst_11 = arith.constant 1.000000e+00 : f32
    %12 = vector.broadcast %cst_11 : f32 to vector<2x128xf32>
    %13 = arith.addf %12, %11 : vector<2x128xf32>
    %14 = arith.divf %12, %13 : vector<2x128xf32>
    %15 = math.tanh %9 : vector<2x128xf32>
    %16 = vector.extract_strided_slice %14 {offsets = [0, 0], sizes = [2, 32], strides = [1, 1]} : vector<2x128xf32> to vector<2x32xf32>
    %17 = vector.extract_strided_slice %15 {offsets = [0, 64], sizes = [2, 32], strides = [1, 1]} : vector<2x128xf32> to vector<2x32xf32>
    %18 = vector.extract_strided_slice %14 {offsets = [0, 96], sizes = [2, 32], strides = [1, 1]} : vector<2x128xf32> to vector<2x32xf32>
    %19 = arith.mulf %16, %17 : vector<2x32xf32>
    %20 = math.tanh %19 : vector<2x32xf32>
    %21 = arith.mulf %18, %20 : vector<2x32xf32>
    %cst_12 = arith.constant dense<0.000000e+00> : vector<2x256xf32>
    %22 = tpu.matmul %21, %6, %cst_12 {dimension_numbers = #tpu.dot_dimension_numbers<[1], [0], [0], [1], [0, 0, 1, 1], [], []>} : vector<2x32xf32>, vector<32x256xf32>, vector<2x256xf32> -> vector<2x256xf32>
    %23 = vector.extract_strided_slice %5 {offsets = [2, 0], sizes = [2, 128], strides = [1, 1]} : vector<16x128xf32> to vector<2x128xf32>
    %24 = vector.extract_strided_slice %22 {offsets = [0, 0], sizes = [2, 128], strides = [1, 1]} : vector<2x256xf32> to vector<2x128xf32>
    %25 = arith.addf %23, %24 : vector<2x128xf32>
    %26 = arith.negf %25 : vector<2x128xf32>
    %27 = math.exp %26 : vector<2x128xf32>
    %cst_13 = arith.constant 1.000000e+00 : f32
    %28 = vector.broadcast %cst_13 : f32 to vector<2x128xf32>
    %29 = arith.addf %28, %27 : vector<2x128xf32>
    %30 = arith.divf %28, %29 : vector<2x128xf32>
    %31 = math.tanh %25 : vector<2x128xf32>
    %32 = vector.extract_strided_slice %30 {offsets = [0, 0], sizes = [2, 32], strides = [1, 1]} : vector<2x128xf32> to vector<2x32xf32>
    %33 = vector.extract_strided_slice %30 {offsets = [0, 32], sizes = [2, 32], strides = [1, 1]} : vector<2x128xf32> to vector<2x32xf32>
    %34 = vector.extract_strided_slice %31 {offsets = [0, 64], sizes = [2, 32], strides = [1, 1]} : vector<2x128xf32> to vector<2x32xf32>
    %35 = vector.extract_strided_slice %30 {offsets = [0, 96], sizes = [2, 32], strides = [1, 1]} : vector<2x128xf32> to vector<2x32xf32>
    %36 = arith.mulf %33, %19 : vector<2x32xf32>
    %37 = arith.mulf %32, %34 : vector<2x32xf32>
    %38 = arith.addf %36, %37 : vector<2x32xf32>
    %39 = math.tanh %38 : vector<2x32xf32>
    %40 = arith.mulf %35, %39 : vector<2x32xf32>
    %cst_14 = arith.constant dense<0.000000e+00> : vector<2x256xf32>
    %41 = tpu.matmul %40, %6, %cst_14 {dimension_numbers = #tpu.dot_dimension_numbers<[1], [0], [0], [1], [0, 0, 1, 1], [], []>} : vector<2x32xf32>, vector<32x256xf32>, vector<2x256xf32> -> vector<2x256xf32>
    %42 = vector.extract_strided_slice %22 {offsets = [0, 128], sizes = [2, 128], strides = [1, 1]} : vector<2x256xf32> to vector<2x128xf32>
    %43 = vector.broadcast %8 : vector<1x128xf32> to vector<2x128xf32>
    %44 = arith.addf %42, %43 : vector<2x128xf32>
    %45 = arith.negf %44 : vector<2x128xf32>
    %46 = math.exp %45 : vector<2x128xf32>
    %cst_15 = arith.constant 1.000000e+00 : f32
    %47 = vector.broadcast %cst_15 : f32 to vector<2x128xf32>
    %48 = arith.addf %47, %46 : vector<2x128xf32>
    %49 = arith.divf %47, %48 : vector<2x128xf32>
    %50 = math.tanh %44 : vector<2x128xf32>
    %51 = vector.extract_strided_slice %49 {offsets = [0, 0], sizes = [2, 32], strides = [1, 1]} : vector<2x128xf32> to vector<2x32xf32>
    %52 = vector.extract_strided_slice %50 {offsets = [0, 64], sizes = [2, 32], strides = [1, 1]} : vector<2x128xf32> to vector<2x32xf32>
    %53 = vector.extract_strided_slice %49 {offsets = [0, 96], sizes = [2, 32], strides = [1, 1]} : vector<2x128xf32> to vector<2x32xf32>
    %54 = arith.mulf %51, %52 : vector<2x32xf32>
    %55 = math.tanh %54 : vector<2x32xf32>
    %56 = arith.mulf %53, %55 : vector<2x32xf32>
    %cst_16 = arith.constant dense<0.000000e+00> : vector<2x128xf32>
    %57 = tpu.matmul %56, %7, %cst_16 {dimension_numbers = #tpu.dot_dimension_numbers<[1], [0], [0], [1], [0, 0, 1, 1], [], []>} : vector<2x32xf32>, vector<32x128xf32>, vector<2x128xf32> -> vector<2x128xf32>
    %58 = vector.extract_strided_slice %5 {offsets = [4, 0], sizes = [2, 128], strides = [1, 1]} : vector<16x128xf32> to vector<2x128xf32>
    %59 = vector.extract_strided_slice %41 {offsets = [0, 0], sizes = [2, 128], strides = [1, 1]} : vector<2x256xf32> to vector<2x128xf32>
    %60 = arith.addf %58, %59 : vector<2x128xf32>
    %61 = arith.negf %60 : vector<2x128xf32>
    %62 = math.exp %61 : vector<2x128xf32>
    %cst_17 = arith.constant 1.000000e+00 : f32
    %63 = vector.broadcast %cst_17 : f32 to vector<2x128xf32>
    %64 = arith.addf %63, %62 : vector<2x128xf32>
    %65 = arith.divf %63, %64 : vector<2x128xf32>
    %66 = math.tanh %60 : vector<2x128xf32>
    %67 = vector.extract_strided_slice %65 {offsets = [0, 0], sizes = [2, 32], strides = [1, 1]} : vector<2x128xf32> to vector<2x32xf32>
    %68 = vector.extract_strided_slice %65 {offsets = [0, 32], sizes = [2, 32], strides = [1, 1]} : vector<2x128xf32> to vector<2x32xf32>
    %69 = vector.extract_strided_slice %66 {offsets = [0, 64], sizes = [2, 32], strides = [1, 1]} : vector<2x128xf32> to vector<2x32xf32>
    %70 = vector.extract_strided_slice %65 {offsets = [0, 96], sizes = [2, 32], strides = [1, 1]} : vector<2x128xf32> to vector<2x32xf32>
    %71 = arith.mulf %68, %38 : vector<2x32xf32>
    %72 = arith.mulf %67, %69 : vector<2x32xf32>
    %73 = arith.addf %71, %72 : vector<2x32xf32>
    %74 = math.tanh %73 : vector<2x32xf32>
    %75 = arith.mulf %70, %74 : vector<2x32xf32>
    %cst_18 = arith.constant dense<0.000000e+00> : vector<2x256xf32>
    %76 = tpu.matmul %75, %6, %cst_18 {dimension_numbers = #tpu.dot_dimension_numbers<[1], [0], [0], [1], [0, 0, 1, 1], [], []>} : vector<2x32xf32>, vector<32x256xf32>, vector<2x256xf32> -> vector<2x256xf32>
    %77 = vector.extract_strided_slice %41 {offsets = [0, 128], sizes = [2, 128], strides = [1, 1]} : vector<2x256xf32> to vector<2x128xf32>
    %78 = vector.broadcast %8 : vector<1x128xf32> to vector<2x128xf32>
    %79 = arith.addf %77, %78 : vector<2x128xf32>
    %80 = arith.addf %79, %57 : vector<2x128xf32>
    %81 = arith.negf %80 : vector<2x128xf32>
    %82 = math.exp %81 : vector<2x128xf32>
    %cst_19 = arith.constant 1.000000e+00 : f32
    %83 = vector.broadcast %cst_19 : f32 to vector<2x128xf32>
    %84 = arith.addf %83, %82 : vector<2x128xf32>
    %85 = arith.divf %83, %84 : vector<2x128xf32>
    %86 = math.tanh %80 : vector<2x128xf32>
    %87 = vector.extract_strided_slice %85 {offsets = [0, 0], sizes = [2, 32], strides = [1, 1]} : vector<2x128xf32> to vector<2x32xf32>
    %88 = vector.extract_strided_slice %85 {offsets = [0, 32], sizes = [2, 32], strides = [1, 1]} : vector<2x128xf32> to vector<2x32xf32>
    %89 = vector.extract_strided_slice %86 {offsets = [0, 64], sizes = [2, 32], strides = [1, 1]} : vector<2x128xf32> to vector<2x32xf32>
    %90 = vector.extract_strided_slice %85 {offsets = [0, 96], sizes = [2, 32], strides = [1, 1]} : vector<2x128xf32> to vector<2x32xf32>
    %91 = arith.mulf %88, %54 : vector<2x32xf32>
    %92 = arith.mulf %87, %89 : vector<2x32xf32>
    %93 = arith.addf %91, %92 : vector<2x32xf32>
    %94 = math.tanh %93 : vector<2x32xf32>
    %95 = arith.mulf %90, %94 : vector<2x32xf32>
    %cst_20 = arith.constant dense<0.000000e+00> : vector<2x128xf32>
    %96 = tpu.matmul %95, %7, %cst_20 {dimension_numbers = #tpu.dot_dimension_numbers<[1], [0], [0], [1], [0, 0, 1, 1], [], []>} : vector<2x32xf32>, vector<32x128xf32>, vector<2x128xf32> -> vector<2x128xf32>
    %97 = vector.extract_strided_slice %5 {offsets = [6, 0], sizes = [2, 128], strides = [1, 1]} : vector<16x128xf32> to vector<2x128xf32>
    %98 = vector.extract_strided_slice %76 {offsets = [0, 0], sizes = [2, 128], strides = [1, 1]} : vector<2x256xf32> to vector<2x128xf32>
    %99 = arith.addf %97, %98 : vector<2x128xf32>
    %100 = arith.negf %99 : vector<2x128xf32>
    %101 = math.exp %100 : vector<2x128xf32>
    %cst_21 = arith.constant 1.000000e+00 : f32
    %102 = vector.broadcast %cst_21 : f32 to vector<2x128xf32>
    %103 = arith.addf %102, %101 : vector<2x128xf32>
    %104 = arith.divf %102, %103 : vector<2x128xf32>
    %105 = math.tanh %99 : vector<2x128xf32>
    %106 = vector.extract_strided_slice %104 {offsets = [0, 0], sizes = [2, 32], strides = [1, 1]} : vector<2x128xf32> to vector<2x32xf32>
    %107 = vector.extract_strided_slice %104 {offsets = [0, 32], sizes = [2, 32], strides = [1, 1]} : vector<2x128xf32> to vector<2x32xf32>
    %108 = vector.extract_strided_slice %105 {offsets = [0, 64], sizes = [2, 32], strides = [1, 1]} : vector<2x128xf32> to vector<2x32xf32>
    %109 = vector.extract_strided_slice %104 {offsets = [0, 96], sizes = [2, 32], strides = [1, 1]} : vector<2x128xf32> to vector<2x32xf32>
    %110 = arith.mulf %107, %73 : vector<2x32xf32>
    %111 = arith.mulf %106, %108 : vector<2x32xf32>
    %112 = arith.addf %110, %111 : vector<2x32xf32>
    %113 = math.tanh %112 : vector<2x32xf32>
    %114 = arith.mulf %109, %113 : vector<2x32xf32>
    %cst_22 = arith.constant dense<0.000000e+00> : vector<2x256xf32>
    %115 = tpu.matmul %114, %6, %cst_22 {dimension_numbers = #tpu.dot_dimension_numbers<[1], [0], [0], [1], [0, 0, 1, 1], [], []>} : vector<2x32xf32>, vector<32x256xf32>, vector<2x256xf32> -> vector<2x256xf32>
    %116 = vector.extract_strided_slice %76 {offsets = [0, 128], sizes = [2, 128], strides = [1, 1]} : vector<2x256xf32> to vector<2x128xf32>
    %117 = vector.broadcast %8 : vector<1x128xf32> to vector<2x128xf32>
    %118 = arith.addf %116, %117 : vector<2x128xf32>
    %119 = arith.addf %118, %96 : vector<2x128xf32>
    %120 = arith.negf %119 : vector<2x128xf32>
    %121 = math.exp %120 : vector<2x128xf32>
    %cst_23 = arith.constant 1.000000e+00 : f32
    %122 = vector.broadcast %cst_23 : f32 to vector<2x128xf32>
    %123 = arith.addf %122, %121 : vector<2x128xf32>
    %124 = arith.divf %122, %123 : vector<2x128xf32>
    %125 = math.tanh %119 : vector<2x128xf32>
    %126 = vector.extract_strided_slice %124 {offsets = [0, 0], sizes = [2, 32], strides = [1, 1]} : vector<2x128xf32> to vector<2x32xf32>
    %127 = vector.extract_strided_slice %124 {offsets = [0, 32], sizes = [2, 32], strides = [1, 1]} : vector<2x128xf32> to vector<2x32xf32>
    %128 = vector.extract_strided_slice %125 {offsets = [0, 64], sizes = [2, 32], strides = [1, 1]} : vector<2x128xf32> to vector<2x32xf32>
    %129 = vector.extract_strided_slice %124 {offsets = [0, 96], sizes = [2, 32], strides = [1, 1]} : vector<2x128xf32> to vector<2x32xf32>
    %130 = arith.mulf %127, %93 : vector<2x32xf32>
    %131 = arith.mulf %126, %128 : vector<2x32xf32>
    %132 = arith.addf %130, %131 : vector<2x32xf32>
    %133 = math.tanh %132 : vector<2x32xf32>
    %134 = arith.mulf %129, %133 : vector<2x32xf32>
    %cst_24 = arith.constant dense<0.000000e+00> : vector<2x128xf32>
    %135 = tpu.matmul %134, %7, %cst_24 {dimension_numbers = #tpu.dot_dimension_numbers<[1], [0], [0], [1], [0, 0, 1, 1], [], []>} : vector<2x32xf32>, vector<32x128xf32>, vector<2x128xf32> -> vector<2x128xf32>
    %136 = vector.extract_strided_slice %5 {offsets = [8, 0], sizes = [2, 128], strides = [1, 1]} : vector<16x128xf32> to vector<2x128xf32>
    %137 = vector.extract_strided_slice %115 {offsets = [0, 0], sizes = [2, 128], strides = [1, 1]} : vector<2x256xf32> to vector<2x128xf32>
    %138 = arith.addf %136, %137 : vector<2x128xf32>
    %139 = arith.negf %138 : vector<2x128xf32>
    %140 = math.exp %139 : vector<2x128xf32>
    %cst_25 = arith.constant 1.000000e+00 : f32
    %141 = vector.broadcast %cst_25 : f32 to vector<2x128xf32>
    %142 = arith.addf %141, %140 : vector<2x128xf32>
    %143 = arith.divf %141, %142 : vector<2x128xf32>
    %144 = math.tanh %138 : vector<2x128xf32>
    %145 = vector.extract_strided_slice %143 {offsets = [0, 0], sizes = [2, 32], strides = [1, 1]} : vector<2x128xf32> to vector<2x32xf32>
    %146 = vector.extract_strided_slice %143 {offsets = [0, 32], sizes = [2, 32], strides = [1, 1]} : vector<2x128xf32> to vector<2x32xf32>
    %147 = vector.extract_strided_slice %144 {offsets = [0, 64], sizes = [2, 32], strides = [1, 1]} : vector<2x128xf32> to vector<2x32xf32>
    %148 = vector.extract_strided_slice %143 {offsets = [0, 96], sizes = [2, 32], strides = [1, 1]} : vector<2x128xf32> to vector<2x32xf32>
    %149 = arith.mulf %146, %112 : vector<2x32xf32>
    %150 = arith.mulf %145, %147 : vector<2x32xf32>
    %151 = arith.addf %149, %150 : vector<2x32xf32>
    %152 = math.tanh %151 : vector<2x32xf32>
    %153 = arith.mulf %148, %152 : vector<2x32xf32>
    %cst_26 = arith.constant dense<0.000000e+00> : vector<2x256xf32>
    %154 = tpu.matmul %153, %6, %cst_26 {dimension_numbers = #tpu.dot_dimension_numbers<[1], [0], [0], [1], [0, 0, 1, 1], [], []>} : vector<2x32xf32>, vector<32x256xf32>, vector<2x256xf32> -> vector<2x256xf32>
    %155 = vector.extract_strided_slice %115 {offsets = [0, 128], sizes = [2, 128], strides = [1, 1]} : vector<2x256xf32> to vector<2x128xf32>
    %156 = vector.broadcast %8 : vector<1x128xf32> to vector<2x128xf32>
    %157 = arith.addf %155, %156 : vector<2x128xf32>
    %158 = arith.addf %157, %135 : vector<2x128xf32>
    %159 = arith.negf %158 : vector<2x128xf32>
    %160 = math.exp %159 : vector<2x128xf32>
    %cst_27 = arith.constant 1.000000e+00 : f32
    %161 = vector.broadcast %cst_27 : f32 to vector<2x128xf32>
    %162 = arith.addf %161, %160 : vector<2x128xf32>
    %163 = arith.divf %161, %162 : vector<2x128xf32>
    %164 = math.tanh %158 : vector<2x128xf32>
    %165 = vector.extract_strided_slice %163 {offsets = [0, 0], sizes = [2, 32], strides = [1, 1]} : vector<2x128xf32> to vector<2x32xf32>
    %166 = vector.extract_strided_slice %163 {offsets = [0, 32], sizes = [2, 32], strides = [1, 1]} : vector<2x128xf32> to vector<2x32xf32>
    %167 = vector.extract_strided_slice %164 {offsets = [0, 64], sizes = [2, 32], strides = [1, 1]} : vector<2x128xf32> to vector<2x32xf32>
    %168 = vector.extract_strided_slice %163 {offsets = [0, 96], sizes = [2, 32], strides = [1, 1]} : vector<2x128xf32> to vector<2x32xf32>
    %169 = arith.mulf %166, %132 : vector<2x32xf32>
    %170 = arith.mulf %165, %167 : vector<2x32xf32>
    %171 = arith.addf %169, %170 : vector<2x32xf32>
    %172 = math.tanh %171 : vector<2x32xf32>
    %173 = arith.mulf %168, %172 : vector<2x32xf32>
    %cst_28 = arith.constant dense<0.000000e+00> : vector<2x128xf32>
    %174 = tpu.matmul %173, %7, %cst_28 {dimension_numbers = #tpu.dot_dimension_numbers<[1], [0], [0], [1], [0, 0, 1, 1], [], []>} : vector<2x32xf32>, vector<32x128xf32>, vector<2x128xf32> -> vector<2x128xf32>
    %175 = vector.extract_strided_slice %5 {offsets = [10, 0], sizes = [2, 128], strides = [1, 1]} : vector<16x128xf32> to vector<2x128xf32>
    %176 = vector.extract_strided_slice %154 {offsets = [0, 0], sizes = [2, 128], strides = [1, 1]} : vector<2x256xf32> to vector<2x128xf32>
    %177 = arith.addf %175, %176 : vector<2x128xf32>
    %178 = arith.negf %177 : vector<2x128xf32>
    %179 = math.exp %178 : vector<2x128xf32>
    %cst_29 = arith.constant 1.000000e+00 : f32
    %180 = vector.broadcast %cst_29 : f32 to vector<2x128xf32>
    %181 = arith.addf %180, %179 : vector<2x128xf32>
    %182 = arith.divf %180, %181 : vector<2x128xf32>
    %183 = math.tanh %177 : vector<2x128xf32>
    %184 = vector.extract_strided_slice %182 {offsets = [0, 0], sizes = [2, 32], strides = [1, 1]} : vector<2x128xf32> to vector<2x32xf32>
    %185 = vector.extract_strided_slice %182 {offsets = [0, 32], sizes = [2, 32], strides = [1, 1]} : vector<2x128xf32> to vector<2x32xf32>
    %186 = vector.extract_strided_slice %183 {offsets = [0, 64], sizes = [2, 32], strides = [1, 1]} : vector<2x128xf32> to vector<2x32xf32>
    %187 = vector.extract_strided_slice %182 {offsets = [0, 96], sizes = [2, 32], strides = [1, 1]} : vector<2x128xf32> to vector<2x32xf32>
    %188 = arith.mulf %185, %151 : vector<2x32xf32>
    %189 = arith.mulf %184, %186 : vector<2x32xf32>
    %190 = arith.addf %188, %189 : vector<2x32xf32>
    %191 = math.tanh %190 : vector<2x32xf32>
    %192 = arith.mulf %187, %191 : vector<2x32xf32>
    %cst_30 = arith.constant dense<0.000000e+00> : vector<2x256xf32>
    %193 = tpu.matmul %192, %6, %cst_30 {dimension_numbers = #tpu.dot_dimension_numbers<[1], [0], [0], [1], [0, 0, 1, 1], [], []>} : vector<2x32xf32>, vector<32x256xf32>, vector<2x256xf32> -> vector<2x256xf32>
    %194 = vector.extract_strided_slice %154 {offsets = [0, 128], sizes = [2, 128], strides = [1, 1]} : vector<2x256xf32> to vector<2x128xf32>
    %195 = vector.broadcast %8 : vector<1x128xf32> to vector<2x128xf32>
    %196 = arith.addf %194, %195 : vector<2x128xf32>
    %197 = arith.addf %196, %174 : vector<2x128xf32>
    %198 = arith.negf %197 : vector<2x128xf32>
    %199 = math.exp %198 : vector<2x128xf32>
    %cst_31 = arith.constant 1.000000e+00 : f32
    %200 = vector.broadcast %cst_31 : f32 to vector<2x128xf32>
    %201 = arith.addf %200, %199 : vector<2x128xf32>
    %202 = arith.divf %200, %201 : vector<2x128xf32>
    %203 = math.tanh %197 : vector<2x128xf32>
    %204 = vector.extract_strided_slice %202 {offsets = [0, 0], sizes = [2, 32], strides = [1, 1]} : vector<2x128xf32> to vector<2x32xf32>
    %205 = vector.extract_strided_slice %202 {offsets = [0, 32], sizes = [2, 32], strides = [1, 1]} : vector<2x128xf32> to vector<2x32xf32>
    %206 = vector.extract_strided_slice %203 {offsets = [0, 64], sizes = [2, 32], strides = [1, 1]} : vector<2x128xf32> to vector<2x32xf32>
    %207 = vector.extract_strided_slice %202 {offsets = [0, 96], sizes = [2, 32], strides = [1, 1]} : vector<2x128xf32> to vector<2x32xf32>
    %208 = arith.mulf %205, %171 : vector<2x32xf32>
    %209 = arith.mulf %204, %206 : vector<2x32xf32>
    %210 = arith.addf %208, %209 : vector<2x32xf32>
    %211 = math.tanh %210 : vector<2x32xf32>
    %212 = arith.mulf %207, %211 : vector<2x32xf32>
    %cst_32 = arith.constant dense<0.000000e+00> : vector<2x128xf32>
    %213 = tpu.matmul %212, %7, %cst_32 {dimension_numbers = #tpu.dot_dimension_numbers<[1], [0], [0], [1], [0, 0, 1, 1], [], []>} : vector<2x32xf32>, vector<32x128xf32>, vector<2x128xf32> -> vector<2x128xf32>
    %214 = vector.extract_strided_slice %5 {offsets = [12, 0], sizes = [2, 128], strides = [1, 1]} : vector<16x128xf32> to vector<2x128xf32>
    %215 = vector.extract_strided_slice %193 {offsets = [0, 0], sizes = [2, 128], strides = [1, 1]} : vector<2x256xf32> to vector<2x128xf32>
    %216 = arith.addf %214, %215 : vector<2x128xf32>
    %217 = arith.negf %216 : vector<2x128xf32>
    %218 = math.exp %217 : vector<2x128xf32>
    %cst_33 = arith.constant 1.000000e+00 : f32
    %219 = vector.broadcast %cst_33 : f32 to vector<2x128xf32>
    %220 = arith.addf %219, %218 : vector<2x128xf32>
    %221 = arith.divf %219, %220 : vector<2x128xf32>
    %222 = math.tanh %216 : vector<2x128xf32>
    %223 = vector.extract_strided_slice %221 {offsets = [0, 0], sizes = [2, 32], strides = [1, 1]} : vector<2x128xf32> to vector<2x32xf32>
    %224 = vector.extract_strided_slice %221 {offsets = [0, 32], sizes = [2, 32], strides = [1, 1]} : vector<2x128xf32> to vector<2x32xf32>
    %225 = vector.extract_strided_slice %222 {offsets = [0, 64], sizes = [2, 32], strides = [1, 1]} : vector<2x128xf32> to vector<2x32xf32>
    %226 = vector.extract_strided_slice %221 {offsets = [0, 96], sizes = [2, 32], strides = [1, 1]} : vector<2x128xf32> to vector<2x32xf32>
    %227 = arith.mulf %224, %190 : vector<2x32xf32>
    %228 = arith.mulf %223, %225 : vector<2x32xf32>
    %229 = arith.addf %227, %228 : vector<2x32xf32>
    %230 = math.tanh %229 : vector<2x32xf32>
    %231 = arith.mulf %226, %230 : vector<2x32xf32>
    %cst_34 = arith.constant dense<0.000000e+00> : vector<2x256xf32>
    %232 = tpu.matmul %231, %6, %cst_34 {dimension_numbers = #tpu.dot_dimension_numbers<[1], [0], [0], [1], [0, 0, 1, 1], [], []>} : vector<2x32xf32>, vector<32x256xf32>, vector<2x256xf32> -> vector<2x256xf32>
    %233 = vector.extract_strided_slice %193 {offsets = [0, 128], sizes = [2, 128], strides = [1, 1]} : vector<2x256xf32> to vector<2x128xf32>
    %234 = vector.broadcast %8 : vector<1x128xf32> to vector<2x128xf32>
    %235 = arith.addf %233, %234 : vector<2x128xf32>
    %236 = arith.addf %235, %213 : vector<2x128xf32>
    %237 = arith.negf %236 : vector<2x128xf32>
    %238 = math.exp %237 : vector<2x128xf32>
    %cst_35 = arith.constant 1.000000e+00 : f32
    %239 = vector.broadcast %cst_35 : f32 to vector<2x128xf32>
    %240 = arith.addf %239, %238 : vector<2x128xf32>
    %241 = arith.divf %239, %240 : vector<2x128xf32>
    %242 = math.tanh %236 : vector<2x128xf32>
    %243 = vector.extract_strided_slice %241 {offsets = [0, 0], sizes = [2, 32], strides = [1, 1]} : vector<2x128xf32> to vector<2x32xf32>
    %244 = vector.extract_strided_slice %241 {offsets = [0, 32], sizes = [2, 32], strides = [1, 1]} : vector<2x128xf32> to vector<2x32xf32>
    %245 = vector.extract_strided_slice %242 {offsets = [0, 64], sizes = [2, 32], strides = [1, 1]} : vector<2x128xf32> to vector<2x32xf32>
    %246 = vector.extract_strided_slice %241 {offsets = [0, 96], sizes = [2, 32], strides = [1, 1]} : vector<2x128xf32> to vector<2x32xf32>
    %247 = arith.mulf %244, %210 : vector<2x32xf32>
    %248 = arith.mulf %243, %245 : vector<2x32xf32>
    %249 = arith.addf %247, %248 : vector<2x32xf32>
    %250 = math.tanh %249 : vector<2x32xf32>
    %251 = arith.mulf %246, %250 : vector<2x32xf32>
    %cst_36 = arith.constant dense<0.000000e+00> : vector<2x128xf32>
    %252 = tpu.matmul %251, %7, %cst_36 {dimension_numbers = #tpu.dot_dimension_numbers<[1], [0], [0], [1], [0, 0, 1, 1], [], []>} : vector<2x32xf32>, vector<32x128xf32>, vector<2x128xf32> -> vector<2x128xf32>
    %253 = vector.extract_strided_slice %5 {offsets = [14, 0], sizes = [2, 128], strides = [1, 1]} : vector<16x128xf32> to vector<2x128xf32>
    %254 = vector.extract_strided_slice %232 {offsets = [0, 0], sizes = [2, 128], strides = [1, 1]} : vector<2x256xf32> to vector<2x128xf32>
    %255 = arith.addf %253, %254 : vector<2x128xf32>
    %256 = arith.negf %255 : vector<2x128xf32>
    %257 = math.exp %256 : vector<2x128xf32>
    %cst_37 = arith.constant 1.000000e+00 : f32
    %258 = vector.broadcast %cst_37 : f32 to vector<2x128xf32>
    %259 = arith.addf %258, %257 : vector<2x128xf32>
    %260 = arith.divf %258, %259 : vector<2x128xf32>
    %261 = math.tanh %255 : vector<2x128xf32>
    %262 = vector.extract_strided_slice %260 {offsets = [0, 0], sizes = [2, 32], strides = [1, 1]} : vector<2x128xf32> to vector<2x32xf32>
    %263 = vector.extract_strided_slice %260 {offsets = [0, 32], sizes = [2, 32], strides = [1, 1]} : vector<2x128xf32> to vector<2x32xf32>
    %264 = vector.extract_strided_slice %261 {offsets = [0, 64], sizes = [2, 32], strides = [1, 1]} : vector<2x128xf32> to vector<2x32xf32>
    %265 = vector.extract_strided_slice %260 {offsets = [0, 96], sizes = [2, 32], strides = [1, 1]} : vector<2x128xf32> to vector<2x32xf32>
    %266 = arith.mulf %263, %229 : vector<2x32xf32>
    %267 = arith.mulf %262, %264 : vector<2x32xf32>
    %268 = arith.addf %266, %267 : vector<2x32xf32>
    %269 = math.tanh %268 : vector<2x32xf32>
    %270 = arith.mulf %265, %269 : vector<2x32xf32>
    %cst_38 = arith.constant dense<0.000000e+00> : vector<2x256xf32>
    %271 = tpu.matmul %270, %6, %cst_38 {dimension_numbers = #tpu.dot_dimension_numbers<[1], [0], [0], [1], [0, 0, 1, 1], [], []>} : vector<2x32xf32>, vector<32x256xf32>, vector<2x256xf32> -> vector<2x256xf32>
    %272 = vector.extract_strided_slice %232 {offsets = [0, 128], sizes = [2, 128], strides = [1, 1]} : vector<2x256xf32> to vector<2x128xf32>
    %273 = vector.broadcast %8 : vector<1x128xf32> to vector<2x128xf32>
    %274 = arith.addf %272, %273 : vector<2x128xf32>
    %275 = arith.addf %274, %252 : vector<2x128xf32>
    %276 = arith.negf %275 : vector<2x128xf32>
    %277 = math.exp %276 : vector<2x128xf32>
    %cst_39 = arith.constant 1.000000e+00 : f32
    %278 = vector.broadcast %cst_39 : f32 to vector<2x128xf32>
    %279 = arith.addf %278, %277 : vector<2x128xf32>
    %280 = arith.divf %278, %279 : vector<2x128xf32>
    %281 = math.tanh %275 : vector<2x128xf32>
    %282 = vector.extract_strided_slice %280 {offsets = [0, 0], sizes = [2, 32], strides = [1, 1]} : vector<2x128xf32> to vector<2x32xf32>
    %283 = vector.extract_strided_slice %280 {offsets = [0, 32], sizes = [2, 32], strides = [1, 1]} : vector<2x128xf32> to vector<2x32xf32>
    %284 = vector.extract_strided_slice %281 {offsets = [0, 64], sizes = [2, 32], strides = [1, 1]} : vector<2x128xf32> to vector<2x32xf32>
    %285 = vector.extract_strided_slice %280 {offsets = [0, 96], sizes = [2, 32], strides = [1, 1]} : vector<2x128xf32> to vector<2x32xf32>
    %286 = arith.mulf %283, %249 : vector<2x32xf32>
    %287 = arith.mulf %282, %284 : vector<2x32xf32>
    %288 = arith.addf %286, %287 : vector<2x32xf32>
    %289 = math.tanh %288 : vector<2x32xf32>
    %290 = arith.mulf %285, %289 : vector<2x32xf32>
    %cst_40 = arith.constant dense<0.000000e+00> : vector<2x128xf32>
    %291 = tpu.matmul %290, %7, %cst_40 {dimension_numbers = #tpu.dot_dimension_numbers<[1], [0], [0], [1], [0, 0, 1, 1], [], []>} : vector<2x32xf32>, vector<32x128xf32>, vector<2x128xf32> -> vector<2x128xf32>
    %292 = vector.extract_strided_slice %271 {offsets = [0, 128], sizes = [2, 128], strides = [1, 1]} : vector<2x256xf32> to vector<2x128xf32>
    %293 = vector.broadcast %8 : vector<1x128xf32> to vector<2x128xf32>
    %294 = arith.addf %292, %293 : vector<2x128xf32>
    %295 = arith.addf %294, %291 : vector<2x128xf32>
    %296 = arith.negf %295 : vector<2x128xf32>
    %297 = math.exp %296 : vector<2x128xf32>
    %cst_41 = arith.constant 1.000000e+00 : f32
    %298 = vector.broadcast %cst_41 : f32 to vector<2x128xf32>
    %299 = arith.addf %298, %297 : vector<2x128xf32>
    %300 = arith.divf %298, %299 : vector<2x128xf32>
    %301 = math.tanh %295 : vector<2x128xf32>
    %302 = vector.extract_strided_slice %300 {offsets = [0, 0], sizes = [2, 32], strides = [1, 1]} : vector<2x128xf32> to vector<2x32xf32>
    %303 = vector.extract_strided_slice %300 {offsets = [0, 32], sizes = [2, 32], strides = [1, 1]} : vector<2x128xf32> to vector<2x32xf32>
    %304 = vector.extract_strided_slice %301 {offsets = [0, 64], sizes = [2, 32], strides = [1, 1]} : vector<2x128xf32> to vector<2x32xf32>
    %305 = vector.extract_strided_slice %300 {offsets = [0, 96], sizes = [2, 32], strides = [1, 1]} : vector<2x128xf32> to vector<2x32xf32>
    %306 = arith.mulf %303, %288 : vector<2x32xf32>
    %307 = arith.mulf %302, %304 : vector<2x32xf32>
    %308 = arith.addf %306, %307 : vector<2x32xf32>
    %309 = math.tanh %308 : vector<2x32xf32>
    %310 = arith.mulf %305, %309 : vector<2x32xf32>
    %c0_42 = arith.constant 0 : index
    %c0_43 = arith.constant 0 : index
    %311 = vector.load %arg6[%c0_42, %c0_43] : memref<32x16xf32, #tpu.memory_space<vmem>>, vector<32x16xf32>
    %cst_44 = arith.constant dense<0.000000e+00> : vector<2x16xf32>
    %312 = tpu.matmul %310, %311, %cst_44 {dimension_numbers = #tpu.dot_dimension_numbers<[1], [0], [0], [1], [0, 0, 1, 1], [], []>} : vector<2x32xf32>, vector<32x16xf32>, vector<2x16xf32> -> vector<2x16xf32>
    %c0_45 = arith.constant 0 : index
    %c0_46 = arith.constant 0 : index
    %313 = vector.load %arg7[%c0_45, %c0_46] : memref<1x16xf32, #tpu.memory_space<vmem>>, vector<1x16xf32>
    %314 = vector.broadcast %313 : vector<1x16xf32> to vector<2x16xf32>
    %315 = arith.addf %312, %314 : vector<2x16xf32>
    %cst_47 = arith.constant 0.000000e+00 : f32
    %316 = vector.broadcast %cst_47 : f32 to vector<2x16xf32>
    %317 = arith.maximumf %315, %316 : vector<2x16xf32>
    %c0_48 = arith.constant 0 : index
    %c0_49 = arith.constant 0 : index
    %318 = vector.load %arg8[%c0_48, %c0_49] : memref<1x16xf32, #tpu.memory_space<vmem>>, vector<1x16xf32>
    %319 = vector.broadcast %318 : vector<1x16xf32> to vector<2x16xf32>
    %320 = arith.mulf %317, %319 : vector<2x16xf32>
    %cst_50 = arith.constant dense<0.000000e+00> : vector<2xf32>
    %321 = vector.multi_reduction <add>, %320, %cst_50 [1] : vector<2x16xf32> to vector<2xf32>
    %322 = vector.shape_cast %321 : vector<2xf32> to vector<2x1xf32>
    %c0_51 = arith.constant 0 : index
    %c0_52 = arith.constant 0 : index
    %323 = vector.load %arg9[%c0_51, %c0_52] : memref<1x1xf32, #tpu.memory_space<vmem>>, vector<1x1xf32>
    %324 = vector.broadcast %323 : vector<1x1xf32> to vector<2x1xf32>
    %325 = arith.addf %322, %324 : vector<2x1xf32>
    %c0_53 = arith.constant 0 : index
    %c0_54 = arith.constant 0 : index
    %326 = vector.load %arg10[%c0_53, %c0_54] : memref<2x1xf32, #tpu.memory_space<vmem>>, vector<2x1xf32>
    tpu.vector_store %arg10[%c0_53, %c0_54], %325 {strides = array<i32>} : memref<2x1xf32, #tpu.memory_space<vmem>>, vector<2x1xf32>,
    return
  }
}

</mosaic_0001>

<bundles_post_ra>
// kernel: tpu_custom_call.1
= control target key start
LH: loop header
LB: loop body
LE: loop exit
PB: predicated region body
PF: predicated region fallthrough
CT: control target
= control target key end

     0   :  { %s2675_s0 = inlined_call_operand.vmem [shape: f32[16,4], index: 0, kind: input, shape index: {}]   ;;  %s2676_s1 = inlined_call_operand.vmem [shape: f32[4,128], index: 1, kind: input, shape index: {}]   ;;  %s2677_s2 = inlined_call_operand.vmem [shape: f32[1,128], index: 2, kind: input, shape index: {}]   ;;  %s2678_s3 = inlined_call_operand.vmem [shape: f32[32,256], index: 3, kind: input, shape index: {}]   ;;  %s2679_s4 = inlined_call_operand.hbm [shape: f32[32,128], index: 4, kind: input, shape index: {}]   ;;  %s2680_s5 = inlined_call_operand.vmem [shape: f32[1,128], index: 5, kind: input, shape index: {}]   ;;  %s2681_s6 = inlined_call_operand.vmem [shape: f32[32,16], index: 6, kind: input, shape index: {}]   ;;  %s2682_s7 = inlined_call_operand.vmem [shape: f32[1,16], index: 7, kind: input, shape index: {}]   ;;  %s2683_s8 = inlined_call_operand.vmem [shape: f32[1,16], index: 8, kind: input, shape index: {}]   ;;  %s2684_s9 = inlined_call_operand.<no memory space> [shape: f32[1,1], index: 9, kind: input, shape index: {}]   ;;  %s2685_s10 = inlined_call_operand.vmem [shape: f32[2,1], index: 10, kind: output, shape index: {}]  }
   0x1   :  { %v15_v0 = vstv %s2684_s9 }
   0x2   :  { %16 = vst [vmem:[#allocation2] sm:$0x1] %v15_v0 }
   0x3   :  { %17 = vsyncpa [#allocation4], 0  ;;  %s2307_s15 = smov [#allocation3]   ;;  %s2283_s19 = scalar_lea.hbm %s2679_s4, 512 }
   0x4   :  { %s31_s16 = sshll.u32 %s2307_s15, 4  ;;  %p2284_p0 = scmp.ne.s32.totalorder %s2679_s4, %s2283_s19  ;;  %s32_s16 = int_to_ptr.vmem [resolvable:$true] %s31_s16 }
   0x5   :  { %p2287_p1 = scmp.lt.u32.totalorder %s2283_s19, %s2679_s4 }
   0x7   :  { %p2289_p2 = pnand %p2287_p1, %p2284_p0 }
   0x9   :  { %2292 = shalt.err (!%p2289_p2)
}
   0xa   :  { %s2293_s9 = scalar_lea.vmem %s32_s16, 512  ;;  %p2298_p4 = scmp.lt.s32.totalorder %s32_s16, %s32_s16 }
   0xb   :  { %p2294_p3 = scmp.ne.s32.totalorder %s32_s16, %s2293_s9  ;;  %p2299_p5 = scmp.lt.s32.totalorder %s2293_s9, %s2293_s9 }
   0xd   :  { %p2300_p6 = por %p2299_p5, %p2298_p4 }
   0xf   :  { %p2301_p7 = pnand %p2300_p6, %p2294_p3 }
  0x11   :  { %2304 = shalt.err (!%p2301_p7)
}
  0x12   :  { %s2308_s24 = smov 128   ;;  %s2309_s25 = smov 8  }
  0x13   :  { %37 = dma.hbm_to_vmem [thread:$0]  %s2679_s4, 512, %s32_s16, [#allocation4], %s2308_s24, %s2308_s24, %s2309_s25  }
  0x14   :  { %2305 = dma.done.wait [#allocation4], 512  }
  0x15   :  { %2306 = vsyncadd [#allocation4], 4294966784  ;;  %vm68_vm0 = vcmask 1043456   ;;  %vm61_vm1 = vcmask 31744   ;;  %v53_v1 = vld [vmem:[%s2676_s1] sm:$0xf] }
  0x16   :  { %v51_v2 = vld [vmem:[%s2675_s0] sm:$0xff]  ;;  %v52_v3 = vld [vmem:[%s2675_s0 + $0x8] sm:$0xff]  ;;  %1941 = vmatprep.subr.msk.mxu0 %vm68_vm0, %v53_v1  ;;  %s2310_s1 = smov 64   ;;  %v150_v17 = vld [vmem:[%s2678_s3 + $0x18] sm:$0xff]  ;;  %v2311_v23 = vmov 0.0   ;;  %s2313_s28 = smov 32  }
  0x17   :  { %1943 = vmatprep.mubr.msk.f32.mxu0 %vm61_vm1, %v51_v2  ;;  %1942 = vmatpush3.msk.msra.mxu0 %vm68_vm0, %v53_v1  ;;  %v1858_v4 = vld [vmem:[%s2677_s2] ss:$0 sm:$0xff]  ;;  %v148_v16 = vld [vmem:[%s2678_s3 + $0x8] sm:$0xff]  ;;  %v149_v20 = vld [vmem:[%s2678_s3 + $0x10] sm:$0xff]  ;;  %vm181_vm2 = vcmask 261120   ;;  %v2314_v58 = vmov 0.0|0.0  }
  0x18   :  { %1944 = vmatmul.mubr.msk.f32.vlgmr.msra.gmra.mrb[0].mxu0 %vm61_vm1, %v52_v3  ;;  %v147_v18 = vld [vmem:[%s2678_s3] sm:$0xff]  ;;  %v2414_v19 = vpack.c.bf16 %v150_v17, %v148_v16  ;;  %v152_v21 = vld [vmem:[%s2678_s3 + $0x28] sm:$0xff]  ;;  %v154_v22 = vld [vmem:[%s2678_s3 + $0x38] sm:$0xff]  ;;  %248 = vmatprep.mubr.f32.mxu1 %v2311_v23  ;;  %vm2315_vm3 = vmmov 0   ;;  %vm1839_vm4 = vcmask 123904   ;;  %vm1851_vm5 = vcmask 1024  }
  0x19   :  { %358 = vmatprep.mubr.f32.mxu0 %v2311_v23  ;;  %v2427_v24 = vpack.c.bf16 %v149_v20, %v147_v18  ;;  %v2429_v25 = vpack.c.bf16 %v154_v22, %v152_v21  ;;  %v151_v26 = vld [vmem:[%s2678_s3 + $0x20] sm:$0xff]  ;;  %v153_v27 = vld [vmem:[%s2678_s3 + $0x30] sm:$0xff]  ;;  %s2312_s3 = smov 96  }
  0x1a   :  { %2035 = vmatprep.subr.bf16.mxu1 %v2414_v19  ;;  %2043 = vmatprep.subr.bf16.mxu0 %v2414_v19  ;;  %v2440_v28 = vpack.c.bf16 %v153_v27, %v151_v26  ;;  %v2455_v34 = vld [vmem:[%s2680_s5] ss:$0 sm:$0xff]  ;;  %v155_v55 = vld [vmem:[#allocation3] sm:$0xff]  ;;  %v156_v56 = vld [vmem:[#allocation3 + $0x8] sm:$0xff] }
  0x1b   :  { %2037 = vmatpush1.bf16.msra.mxu1 %v2427_v24  ;;  %2045 = vmatpush1.bf16.msra.mxu0 %v2427_v24  ;;  %v157_v57 = vld [vmem:[#allocation3 + $0x10] sm:$0xff]  ;;  %v2463_v59 = vpack.c.bf16 %v156_v56, %v155_v55  ;;  %v158_v60 = vld [vmem:[#allocation3 + $0x18] sm:$0xff] }
  0x1c   :  { %2039 = vmatprep.subr.bf16.mxu1 %v2429_v25  ;;  %2047 = vmatprep.subr.bf16.mxu0 %v2429_v25  ;;  %v2468_v61 = vpack.c.bf16 %v158_v60, %v157_v57 }
  0x1f   :  { %2041 = vmatpush1.bf16.msra.mxu1 %v2440_v28  ;;  %2049 = vmatpush1.bf16.msra.mxu0 %v2440_v28 }
  0x20   :  { %2057 = vmatprep.subr.bf16.mxu0 %v2414_v19  ;;  %2050 = vmatprep.subr.bf16.mxu1 %v2314_v58 }
  0xeb   :  { %v1945_v5 = vpop.f32.mrb[0].mxu0 }
  0xec   :  { %v2398_v6 = vadd.f32 %v1945_v5, %v1858_v4  ;;  %v138_v7 = vpop.f32.mrb[1].mxu0 }
  0xed   :  { %v2400_v8 = vadd.f32 %v1858_v4, %v138_v7 }
  0xef   :  { %2155 = vtanh.f32 %v2400_v8  ;;  %v1862_v10 = vmul.f32 -1.442695, %v2400_v8 }
  0xf1   :  { %2157 = vpow2.f32 %v1862_v10 }
  0xf9   :  { %v2156_v9 = vpop.eup %2155 }
  0xfa   :  { %168 = vrot.lane.b32.xlu0 %v2156_v9, %s2310_s1 }
  0xfb   :  { %v2158_v11 = vpop.eup %2157 }
  0xfc   :  { %v163_v12 = vadd.f32 1.0, %v2158_v11 }
  0xfe   :  { %2159 = vrcp.f32 %v163_v12 }
 0x108   :  { %v2160_v13 = vpop.eup %2159 }
 0x16c   :  { %v169_v14 = vpop.permute.xlu0 %168 }
 0x16d   :  { %v171_v15 = vmul.f32 %v2160_v13, %v169_v14 }
 0x16f   :  { %2161 = vtanh.f32 %v171_v15  ;;  %v267_v30 = vrot.slane %v171_v15, 6 }
 0x179   :  { %v2162_v29 = vpop.eup %2161 }
 0x17a   :  { %174 = vrot.lane.b32.xlu0 %v2162_v29, %s2312_s3 }
 0x17e   :  { %268 = vrot.lane.b32.xlu0 %v267_v30, %s2313_s28 }
 0x1ec   :  { %v175_v31 = vpop.permute.xlu0 %174 }
 0x1ed   :  { %v177_v32 = vmul.f32 %v2160_v13, %v175_v31 }
 0x1ef   :  { %179 = vrot.lane.b32.xlu1 %v177_v32, %s2313_s28 }
 0x1f0   :  { %v269_v48 = vpop.permute.xlu0 %268 }
 0x261   :  { %v180_v33 = vpop.permute.xlu1 %179 }
 0x262   :  { %1863 = vmatmul.mubr.msk.f32.vlgmr.msra.gmra.mrb[0].mxu1 %vm181_vm2, %v180_v33 }
 0x263   :  { %1954 = vmatprep.mubr.msk.f32.mxu1 %vm2315_vm3, %v2311_v23  ;;  %2052 = vmatpush3.bf16.msra.mxu1 %v2463_v59 }
 0x264   :  { %2053 = vmatprep.subr.bf16.mxu1 %v2314_v58 }
 0x267   :  { %2055 = vmatpush3.bf16.msra.mxu1 %v2468_v61 }
 0x268   :  { %2064 = vmatprep.subr.bf16.mxu1 %v2314_v58 }
 0x335   :  { %v250_v35 = vpop.f32.mrb[0].mxu1 }
 0x336   :  { %v256_v36 = vrot.slane %v250_v35, 6  ;;  %v252_v37 = vpop.f32.mrb[1].mxu1 }
 0x337   :  { %v371_v38 = vadd.f32 %v2455_v34, %v252_v37 }
 0x338   :  { %v258_v39 = vadd.f32 %v256_v36, %v2400_v8 }
 0x339   :  { %2163 = vtanh.f32 %v371_v38  ;;  %v1867_v42 = vmul.f32 -1.442695, %v371_v38 }
 0x33a   :  { %2165 = vtanh.f32 %v258_v39  ;;  %v1864_v43 = vmul.f32 -1.442695, %v258_v39 }
 0x33b   :  { %2167 = vpow2.f32 %v1867_v42 }
 0x33c   :  { %2169 = vpow2.f32 %v1864_v43 }
 0x343   :  { %v2164_v40 = vpop.eup %2163 }
 0x344   :  { %v2166_v41 = vpop.eup %2165  ;;  %380 = vrot.lane.b32.xlu0 %v2164_v40, %s2310_s1 }
 0x345   :  { %273 = vrot.lane.b32.xlu1 %v2166_v41, %s2310_s1  ;;  %v2168_v44 = vpop.eup %2167 }
 0x346   :  { %v2170_v45 = vpop.eup %2169  ;;  %v375_v46 = vadd.f32 1.0, %v2168_v44 }
 0x347   :  { %v262_v47 = vadd.f32 1.0, %v2170_v45 }
 0x348   :  { %2171 = vrcp.f32 %v375_v46 }
 0x349   :  { %2173 = vrcp.f32 %v262_v47 }
 0x352   :  { %v2172_v49 = vpop.eup %2171 }
 0x353   :  { %v2174_v51 = vpop.eup %2173 }
 0x354   :  { %v271_v63 = vmul.f32 %v2174_v51, %v269_v48 }
 0x3b6   :  { %v381_v50 = vpop.permute.xlu0 %380 }
 0x3b7   :  { %v383_v52 = vmul.f32 %v2172_v49, %v381_v50  ;;  %v274_v53 = vpop.permute.xlu1 %273 }
 0x3b8   :  { %v276_v54 = vmul.f32 %v2174_v51, %v274_v53 }
 0x3b9   :  { %2175 = vtanh.f32 %v383_v52 }
 0x3ba   :  { %278 = vrot.lane.b32.xlu1 %v276_v54, %s2313_s28 }
 0x3c3   :  { %v2176_v62 = vpop.eup %2175 }
 0x3c4   :  { %386 = vrot.lane.b32.xlu0 %v2176_v62, %s2312_s3 }
 0x42c   :  { %v279_v0 = vpop.permute.xlu1 %278 }
 0x42d   :  { %v281_v1 = vadd.f32 %v279_v0, %v271_v63 }
 0x42f   :  { %2177 = vtanh.f32 %v281_v1  ;;  %v477_v40 = vrot.slane %v281_v1, 6 }
 0x436   :  { %v387_v2 = vpop.permute.xlu0 %386 }
 0x437   :  { %v389_v3 = vmul.f32 %v2172_v49, %v387_v2 }
 0x439   :  { %v2178_v4 = vpop.eup %2177  ;;  %391 = vrot.lane.b32.xlu0 %v389_v3, %s2313_s28 }
 0x43a   :  { %284 = vrot.lane.b32.xlu1 %v2178_v4, %s2310_s1 }
 0x4ab   :  { %v392_v5 = vpop.permute.xlu0 %391 }
 0x4ac   :  { %v285_v7 = vpop.permute.xlu1 %284  ;;  %1955 = vmatmul.mubr.msk.f32.vlgmr.msra.gmra.mrb[2].mxu1 %vm181_vm2, %v392_v5 }
 0x4ad   :  { %v287_v9 = vmul.f32 %v2174_v51, %v285_v7  ;;  %2066 = vmatpush3.bf16.msra.mxu1 %v2463_v59  ;;  %1965 = vmatprep.mubr.msk.f32.mxu1 %vm2315_vm3, %v2311_v23 }
 0x4ae   :  { %2067 = vmatprep.subr.bf16.mxu1 %v2314_v58 }
 0x4af   :  { %v289_v10 = vrot.slane %v287_v9, 2 }
 0x4b1   :  { %290 = vrot.lane.b32.xlu1 %v289_v10, %s2313_s28  ;;  %2069 = vmatpush3.bf16.msra.mxu1 %v2468_v61 }
 0x4b2   :  { %2078 = vmatprep.subr.bf16.mxu1 %v2314_v58 }
 0x523   :  { %v291_v11 = vpop.permute.xlu1 %290 }
 0x524   :  { %1865 = vmatmul.mubr.msk.f32.vlgmr.msra.gmra.mrb[2].mxu0 %vm181_vm2, %v291_v11 }
 0x525   :  { %2059 = vmatpush1.bf16.msra.mxu0 %v2427_v24  ;;  %566 = vmatprep.mubr.f32.mxu0 %v2311_v23 }
 0x526   :  { %2061 = vmatprep.subr.bf16.mxu0 %v2429_v25 }
 0x529   :  { %2063 = vmatpush1.bf16.msra.mxu0 %v2440_v28 }
 0x52a   :  { %2071 = vmatprep.subr.bf16.mxu0 %v2414_v19 }
 0x57f   :  { %v461_v12 = vpop.f32.mrb[2].mxu1 }
 0x580   :  { %v1956_v13 = vpop.f32.mrb[3].mxu1 }
 0x5f7   :  { %v360_v14 = vpop.f32.mrb[2].mxu0 }
 0x5f8   :  { %v466_v15 = vrot.slane %v360_v14, 4  ;;  %v362_v16 = vpop.f32.mrb[3].mxu0 }
 0x5f9   :  { %v573_v17 = vadd.f32 %v2455_v34, %v362_v16 }
 0x5fa   :  { %v468_v18 = vadd.f32 %v466_v15, %v2400_v8 }
 0x5fb   :  { %v574_v20 = vadd.f32 %v573_v17, %v461_v12 }
 0x5fc   :  { %2179 = vtanh.f32 %v468_v18  ;;  %v1869_v26 = vmul.f32 -1.442695, %v468_v18 }
 0x5fd   :  { %2181 = vtanh.f32 %v574_v20  ;;  %v1871_v27 = vmul.f32 -1.442695, %v574_v20 }
 0x5fe   :  { %2183 = vpow2.f32 %v1869_v26 }
 0x5ff   :  { %2185 = vpow2.f32 %v1871_v27 }
 0x606   :  { %v2180_v21 = vpop.eup %2179 }
 0x607   :  { %v2182_v22 = vpop.eup %2181  ;;  %481 = vrot.lane.b32.xlu1 %v2180_v21, %s2310_s1 }
 0x608   :  { %588 = vrot.lane.b32.xlu0 %v2182_v22, %s2310_s1  ;;  %v2184_v29 = vpop.eup %2183 }
 0x609   :  { %v472_v30 = vadd.f32 1.0, %v2184_v29  ;;  %v2186_v31 = vpop.eup %2185 }
 0x60a   :  { %v578_v32 = vadd.f32 1.0, %v2186_v31 }
 0x60b   :  { %2187 = vrcp.f32 %v472_v30 }
 0x60c   :  { %583 = vrot.lane.b32.xlu0 %v383_v52, %s2313_s28  ;;  %2189 = vrcp.f32 %v578_v32 }
 0x615   :  { %v2188_v33 = vpop.eup %2187 }
 0x616   :  { %v2190_v38 = vpop.eup %2189  ;;  %v479_v41 = vmul.f32 %v2188_v33, %v477_v40 }
 0x679   :  { %v482_v35 = vpop.permute.xlu1 %481 }
 0x67a   :  { %v484_v36 = vmul.f32 %v2188_v33, %v482_v35  ;;  %v589_v37 = vpop.permute.xlu0 %588 }
 0x67b   :  { %v591_v39 = vmul.f32 %v2190_v38, %v589_v37 }
 0x67c   :  { %486 = vrot.lane.b32.xlu1 %v484_v36, %s2313_s28 }
 0x67e   :  { %v584_v42 = vpop.permute.xlu0 %583 }
 0x67f   :  { %v586_v45 = vmul.f32 %v2190_v38, %v584_v42 }
 0x680   :  { %593 = vrot.lane.b32.xlu1 %v591_v39, %s2313_s28 }
 0x6ee   :  { %v487_v43 = vpop.permute.xlu1 %486 }
 0x6ef   :  { %v2497_v44 = vadd.f32 %v487_v43, %v479_v41 }
 0x6f1   :  { %2191 = vtanh.f32 %v2497_v44  ;;  %v690_v20 = vrot.slane %v2497_v44, 6 }
 0x6f2   :  { %v594_v46 = vpop.permute.xlu1 %593 }
 0x6f3   :  { %v596_v47 = vadd.f32 %v594_v46, %v586_v45 }
 0x6f5   :  { %2193 = vtanh.f32 %v596_v47 }
 0x6fb   :  { %v2192_v48 = vpop.eup %2191 }
 0x6fc   :  { %492 = vrot.lane.b32.xlu0 %v2192_v48, %s2310_s1 }
 0x6ff   :  { %v2194_v49 = vpop.eup %2193 }
 0x700   :  { %599 = vrot.lane.b32.xlu1 %v2194_v49, %s2310_s1 }
 0x76e   :  { %v493_v50 = vpop.permute.xlu0 %492 }
 0x76f   :  { %v495_v51 = vmul.f32 %v2188_v33, %v493_v50 }
 0x771   :  { %v497_v52 = vrot.slane %v495_v51, 4 }
 0x772   :  { %v600_v53 = vpop.permute.xlu1 %599 }
 0x773   :  { %v602_v54 = vmul.f32 %v2190_v38, %v600_v53  ;;  %498 = vrot.lane.b32.xlu0 %v497_v52, %s2313_s28 }
 0x775   :  { %604 = vrot.lane.b32.xlu1 %v602_v54, %s2313_s28 }
 0x7e5   :  { %v499_v55 = vpop.permute.xlu0 %498 }
 0x7e6   :  { %1870 = vmatmul.mubr.msk.f32.vlgmr.msra.gmra.mrb[4].mxu0 %vm181_vm2, %v499_v55 }
 0x7e7   :  { %v605_v56 = vpop.permute.xlu1 %604  ;;  %2073 = vmatpush1.bf16.msra.mxu0 %v2427_v24  ;;  %779 = vmatprep.mubr.f32.mxu0 %v2311_v23 }
 0x7e8   :  { %1966 = vmatmul.mubr.msk.f32.vlgmr.msra.gmra.mrb[4].mxu1 %vm181_vm2, %v605_v56  ;;  %2075 = vmatprep.subr.bf16.mxu0 %v2429_v25 }
 0x7e9   :  { %2080 = vmatpush3.bf16.msra.mxu1 %v2463_v59  ;;  %1976 = vmatprep.mubr.msk.f32.mxu1 %vm2315_vm3, %v2311_v23 }
 0x7ea   :  { %2081 = vmatprep.subr.bf16.mxu1 %v2314_v58 }
 0x7eb   :  { %2077 = vmatpush1.bf16.msra.mxu0 %v2440_v28 }
 0x7ec   :  { %2085 = vmatprep.subr.bf16.mxu0 %v2414_v19 }
 0x7ed   :  { %2083 = vmatpush3.bf16.msra.mxu1 %v2468_v61 }
 0x7ee   :  { %2092 = vmatprep.subr.bf16.mxu1 %v2314_v58 }
 0x8b9   :  { %v568_v57 = vpop.f32.mrb[4].mxu0 }
 0x8ba   :  { %v679_v60 = vrot.slane %v568_v57, 2  ;;  %v570_v62 = vpop.f32.mrb[5].mxu0 }
 0x8bb   :  { %v786_v63 = vadd.f32 %v2455_v34, %v570_v62  ;;  %v674_v0 = vpop.f32.mrb[4].mxu1 }
 0x8bc   :  { %v681_v1 = vadd.f32 %v679_v60, %v2400_v8  ;;  %v1967_v2 = vpop.f32.mrb[5].mxu1 }
 0x8bd   :  { %v787_v3 = vadd.f32 %v786_v63, %v674_v0 }
 0x8be   :  { %2195 = vtanh.f32 %v681_v1  ;;  %v1873_v7 = vmul.f32 -1.442695, %v681_v1 }
 0x8bf   :  { %2197 = vtanh.f32 %v787_v3  ;;  %v1875_v9 = vmul.f32 -1.442695, %v787_v3 }
 0x8c0   :  { %2199 = vpow2.f32 %v1873_v7 }
 0x8c1   :  { %2201 = vpow2.f32 %v1875_v9 }
 0x8c8   :  { %v2196_v4 = vpop.eup %2195 }
 0x8c9   :  { %v2198_v5 = vpop.eup %2197  ;;  %694 = vrot.lane.b32.xlu0 %v2196_v4, %s2310_s1 }
 0x8ca   :  { %797 = vrot.lane.b32.xlu1 %v2198_v5, %s2310_s1  ;;  %v2200_v10 = vpop.eup %2199 }
 0x8cb   :  { %v2202_v11 = vpop.eup %2201  ;;  %v685_v12 = vadd.f32 1.0, %v2200_v10 }
 0x8cc   :  { %v791_v13 = vadd.f32 1.0, %v2202_v11 }
 0x8cd   :  { %2203 = vrcp.f32 %v685_v12 }
 0x8ce   :  { %2205 = vrcp.f32 %v791_v13 }
 0x8d7   :  { %v2204_v8 = vpop.eup %2203 }
 0x8d8   :  { %v2206_v15 = vpop.eup %2205  ;;  %v692_v21 = vmul.f32 %v2204_v8, %v690_v20 }
 0x8d9   :  { %v795_v26 = vmul.f32 %v2206_v15, %v596_v47 }
 0x93b   :  { %v695_v14 = vpop.permute.xlu0 %694 }
 0x93c   :  { %v697_v16 = vmul.f32 %v2204_v8, %v695_v14  ;;  %v798_v17 = vpop.permute.xlu1 %797 }
 0x93d   :  { %v800_v18 = vmul.f32 %v2206_v15, %v798_v17 }
 0x93e   :  { %699 = vrot.lane.b32.xlu0 %v697_v16, %s2313_s28 }
 0x93f   :  { %802 = vrot.lane.b32.xlu1 %v800_v18, %s2313_s28 }
 0x9b0   :  { %v700_v22 = vpop.permute.xlu0 %699 }
 0x9b1   :  { %v2524_v27 = vadd.f32 %v700_v22, %v692_v21  ;;  %v803_v29 = vpop.permute.xlu1 %802 }
 0x9b2   :  { %v2526_v30 = vadd.f32 %v803_v29, %v795_v26 }
 0x9b3   :  { %2207 = vtanh.f32 %v2524_v27  ;;  %v896_v1 = vrot.slane %v2524_v27, 6 }
 0x9b4   :  { %2209 = vtanh.f32 %v2526_v30 }
 0x9bd   :  { %v2208_v31 = vpop.eup %2207 }
 0x9be   :  { %v2210_v32 = vpop.eup %2209  ;;  %705 = vrot.lane.b32.xlu0 %v2208_v31, %s2310_s1 }
 0x9bf   :  { %808 = vrot.lane.b32.xlu1 %v2210_v32, %s2310_s1 }
 0xa30   :  { %v706_v33 = vpop.permute.xlu0 %705 }
 0xa31   :  { %v708_v35 = vmul.f32 %v2204_v8, %v706_v33  ;;  %v809_v36 = vpop.permute.xlu1 %808 }
 0xa32   :  { %v811_v37 = vmul.f32 %v2206_v15, %v809_v36 }
 0xa33   :  { %v710_v38 = vrot.slane %v708_v35, 6 }
 0xa34   :  { %813 = vrot.lane.b32.xlu1 %v811_v37, %s2313_s28 }
 0xa35   :  { %711 = vrot.lane.b32.xlu0 %v710_v38, %s2313_s28 }
 0xaa6   :  { %v814_v39 = vpop.permute.xlu1 %813 }
 0xaa7   :  { %v712_v40 = vpop.permute.xlu0 %711  ;;  %1977 = vmatmul.mubr.msk.f32.vlgmr.msra.gmra.mrb[6].mxu1 %vm181_vm2, %v814_v39 }
 0xaa8   :  { %1874 = vmatmul.mubr.msk.f32.vlgmr.msra.gmra.mrb[6].mxu0 %vm181_vm2, %v712_v40  ;;  %2094 = vmatpush3.bf16.msra.mxu1 %v2463_v59 }
 0xaa9   :  { %2087 = vmatpush1.bf16.msra.mxu0 %v2427_v24  ;;  %984 = vmatprep.mubr.f32.mxu0 %v2311_v23 }
 0xaaa   :  { %2089 = vmatprep.subr.bf16.mxu0 %v2429_v25  ;;  %2095 = vmatprep.subr.bf16.mxu1 %v2314_v58 }
 0xaab   :  { %1987 = vmatprep.mubr.msk.f32.mxu1 %vm2315_vm3, %v2311_v23 }
 0xaac   :  { %2097 = vmatpush3.bf16.msra.mxu1 %v2468_v61 }
 0xaad   :  { %2091 = vmatpush1.bf16.msra.mxu0 %v2440_v28  ;;  %2106 = vmatprep.subr.bf16.mxu1 %v2314_v58 }
 0xaae   :  { %2099 = vmatprep.subr.bf16.mxu0 %v2414_v19 }
 0xb7a   :  { %v883_v41 = vpop.f32.mrb[6].mxu1 }
 0xb7b   :  { %v781_v42 = vpop.f32.mrb[6].mxu0  ;;  %v1978_v43 = vpop.f32.mrb[7].mxu1 }
 0xb7c   :  { %v887_v44 = vadd.f32 %v781_v42, %v2398_v6  ;;  %v783_v45 = vpop.f32.mrb[7].mxu0 }
 0xb7d   :  { %v991_v46 = vadd.f32 %v2455_v34, %v783_v45 }
 0xb7e   :  { %2211 = vtanh.f32 %v887_v44  ;;  %v1877_v50 = vmul.f32 -1.442695, %v887_v44 }
 0xb7f   :  { %v992_v47 = vadd.f32 %v991_v46, %v883_v41 }
 0xb81   :  { %2213 = vtanh.f32 %v992_v47  ;;  %v1879_v51 = vmul.f32 -1.442695, %v992_v47 }
 0xb82   :  { %2215 = vpow2.f32 %v1877_v50 }
 0xb83   :  { %2217 = vpow2.f32 %v1879_v51 }
 0xb88   :  { %v2212_v48 = vpop.eup %2211 }
 0xb89   :  { %900 = vrot.lane.b32.xlu0 %v2212_v48, %s2310_s1 }
 0xb8b   :  { %v2214_v49 = vpop.eup %2213 }
 0xb8c   :  { %1002 = vrot.lane.b32.xlu1 %v2214_v49, %s2310_s1  ;;  %v2216_v52 = vpop.eup %2215 }
 0xb8d   :  { %v2218_v53 = vpop.eup %2217  ;;  %v891_v54 = vadd.f32 1.0, %v2216_v52 }
 0xb8e   :  { %v996_v55 = vadd.f32 1.0, %v2218_v53 }
 0xb8f   :  { %2219 = vrcp.f32 %v891_v54 }
 0xb90   :  { %2221 = vrcp.f32 %v996_v55 }
 0xb99   :  { %v2220_v56 = vpop.eup %2219 }
 0xb9a   :  { %v2222_v62 = vpop.eup %2221  ;;  %v898_v2 = vmul.f32 %v2220_v56, %v896_v1 }
 0xb9b   :  { %v1000_v5 = vmul.f32 %v2222_v62, %v2526_v30 }
 0xbfb   :  { %v901_v57 = vpop.permute.xlu0 %900 }
 0xbfc   :  { %v903_v60 = vmul.f32 %v2220_v56, %v901_v57 }
 0xbfe   :  { %905 = vrot.lane.b32.xlu0 %v903_v60, %s2313_s28  ;;  %v1003_v63 = vpop.permute.xlu1 %1002 }
 0xbff   :  { %v1005_v0 = vmul.f32 %v2222_v62, %v1003_v63 }
 0xc01   :  { %1007 = vrot.lane.b32.xlu1 %v1005_v0, %s2313_s28 }
 0xc70   :  { %v906_v3 = vpop.permute.xlu0 %905 }
 0xc71   :  { %v2554_v4 = vadd.f32 %v906_v3, %v898_v2 }
 0xc73   :  { %2223 = vtanh.f32 %v2554_v4  ;;  %v1008_v7 = vpop.permute.xlu1 %1007  ;;  %v1104_v45 = vrot.slane %v2554_v4, 6 }
 0xc74   :  { %v1010_v9 = vadd.f32 %v1008_v7, %v1000_v5 }
 0xc76   :  { %2225 = vtanh.f32 %v1010_v9 }
 0xc7d   :  { %v2224_v10 = vpop.eup %2223 }
 0xc7e   :  { %911 = vrot.lane.b32.xlu0 %v2224_v10, %s2310_s1 }
 0xc80   :  { %v2226_v11 = vpop.eup %2225 }
 0xc81   :  { %1013 = vrot.lane.b32.xlu1 %v2226_v11, %s2310_s1 }
 0xcf0   :  { %v912_v12 = vpop.permute.xlu0 %911 }
 0xcf1   :  { %v914_v13 = vmul.f32 %v2220_v56, %v912_v12 }
 0xcf3   :  { %916 = vrot.lane.b32.xlu0 %v914_v13, %s2313_s28  ;;  %v1014_v8 = vpop.permute.xlu1 %1013 }
 0xcf4   :  { %v1016_v14 = vmul.f32 %v2222_v62, %v1014_v8 }
 0xcf6   :  { %1018 = vrot.lane.b32.xlu1 %v1016_v14, %s2313_s28 }
 0xd65   :  { %v917_v15 = vpop.permute.xlu0 %916 }
 0xd66   :  { %1878 = vmatmul.mubr.msk.f32.vlgmr.msra.gmra.mrb[8].mxu0 %vm181_vm2, %v917_v15 }
 0xd67   :  { %2101 = vmatpush1.bf16.msra.mxu0 %v2427_v24  ;;  %1193 = vmatprep.mubr.f32.mxu0 %v2311_v23 }
 0xd68   :  { %v1019_v16 = vpop.permute.xlu1 %1018  ;;  %2103 = vmatprep.subr.bf16.mxu0 %v2429_v25 }
 0xd69   :  { %1988 = vmatmul.mubr.msk.f32.vlgmr.msra.gmra.mrb[8].mxu1 %vm181_vm2, %v1019_v16 }
 0xd6a   :  { %2108 = vmatpush3.bf16.msra.mxu1 %v2463_v59  ;;  %1998 = vmatprep.mubr.msk.f32.mxu1 %vm2315_vm3, %v2311_v23 }
 0xd6b   :  { %2109 = vmatprep.subr.bf16.mxu1 %v2314_v58  ;;  %2105 = vmatpush1.bf16.msra.mxu0 %v2440_v28 }
 0xd6c   :  { %2113 = vmatprep.subr.bf16.mxu0 %v2414_v19 }
 0xd6e   :  { %2111 = vmatpush3.bf16.msra.mxu1 %v2468_v61 }
 0xd6f   :  { %2120 = vmatprep.subr.bf16.mxu1 %v2314_v58 }
 0xe39   :  { %v986_v17 = vpop.f32.mrb[8].mxu0 }
 0xe3a   :  { %v1093_v18 = vrot.slane %v986_v17, 6  ;;  %v988_v20 = vpop.f32.mrb[9].mxu0 }
 0xe3b   :  { %v1200_v21 = vadd.f32 %v2455_v34, %v988_v20 }
 0xe3c   :  { %v1095_v22 = vadd.f32 %v1093_v18, %v2398_v6  ;;  %v1088_v26 = vpop.f32.mrb[8].mxu1 }
 0xe3d   :  { %v1201_v27 = vadd.f32 %v1200_v21, %v1088_v26  ;;  %v1989_v29 = vpop.f32.mrb[9].mxu1 }
 0xe3e   :  { %2227 = vtanh.f32 %v1095_v22  ;;  %v1881_v32 = vmul.f32 -1.442695, %v1095_v22 }
 0xe3f   :  { %2229 = vtanh.f32 %v1201_v27  ;;  %v1883_v33 = vmul.f32 -1.442695, %v1201_v27 }
 0xe40   :  { %2231 = vpow2.f32 %v1881_v32 }
 0xe41   :  { %2233 = vpow2.f32 %v1883_v33 }
 0xe48   :  { %v2228_v30 = vpop.eup %2227 }
 0xe49   :  { %v2230_v31 = vpop.eup %2229  ;;  %1108 = vrot.lane.b32.xlu0 %v2228_v30, %s2310_s1 }
 0xe4a   :  { %1211 = vrot.lane.b32.xlu1 %v2230_v31, %s2310_s1  ;;  %v2232_v35 = vpop.eup %2231 }
 0xe4b   :  { %v2234_v36 = vpop.eup %2233  ;;  %v1099_v37 = vadd.f32 1.0, %v2232_v35 }
 0xe4c   :  { %v1205_v38 = vadd.f32 1.0, %v2234_v36 }
 0xe4d   :  { %2235 = vrcp.f32 %v1099_v37 }
 0xe4e   :  { %2237 = vrcp.f32 %v1205_v38 }
 0xe57   :  { %v2236_v39 = vpop.eup %2235 }
 0xe58   :  { %v2238_v41 = vpop.eup %2237  ;;  %v1106_v46 = vmul.f32 %v2236_v39, %v1104_v45 }
 0xe59   :  { %v1209_v48 = vmul.f32 %v2238_v41, %v1010_v9 }
 0xebb   :  { %v1109_v40 = vpop.permute.xlu0 %1108 }
 0xebc   :  { %v1111_v42 = vmul.f32 %v2236_v39, %v1109_v40  ;;  %v1212_v43 = vpop.permute.xlu1 %1211 }
 0xebd   :  { %v1214_v44 = vmul.f32 %v2238_v41, %v1212_v43 }
 0xebe   :  { %1113 = vrot.lane.b32.xlu0 %v1111_v42, %s2313_s28 }
 0xebf   :  { %1216 = vrot.lane.b32.xlu1 %v1214_v44, %s2313_s28 }
 0xf30   :  { %v1114_v47 = vpop.permute.xlu0 %1113 }
 0xf31   :  { %v2582_v49 = vadd.f32 %v1114_v47, %v1106_v46  ;;  %v1217_v50 = vpop.permute.xlu1 %1216 }
 0xf32   :  { %v2584_v51 = vadd.f32 %v1217_v50, %v1209_v48 }
 0xf33   :  { %2239 = vtanh.f32 %v2582_v49  ;;  %v1313_v26 = vrot.slane %v2582_v49, 6 }
 0xf34   :  { %2241 = vtanh.f32 %v2584_v51 }
 0xf3d   :  { %v2240_v52 = vpop.eup %2239 }
 0xf3e   :  { %v2242_v53 = vpop.eup %2241  ;;  %1119 = vrot.lane.b32.xlu0 %v2240_v52, %s2310_s1 }
 0xf3f   :  { %1222 = vrot.lane.b32.xlu1 %v2242_v53, %s2310_s1 }
 0xfb0   :  { %v1120_v54 = vpop.permute.xlu0 %1119 }
 0xfb1   :  { %v1122_v55 = vmul.f32 %v2236_v39, %v1120_v54  ;;  %v1223_v56 = vpop.permute.xlu1 %1222 }
 0xfb2   :  { %v1225_v57 = vmul.f32 %v2238_v41, %v1223_v56 }
 0xfb3   :  { %v1124_v60 = vrot.slane %v1122_v55, 2 }
 0xfb4   :  { %1227 = vrot.lane.b32.xlu1 %v1225_v57, %s2313_s28 }
 0xfb5   :  { %1125 = vrot.lane.b32.xlu0 %v1124_v60, %s2313_s28 }
0x1026   :  { %v1228_v62 = vpop.permute.xlu1 %1227 }
0x1027   :  { %v1126_v63 = vpop.permute.xlu0 %1125  ;;  %1999 = vmatmul.mubr.msk.f32.vlgmr.msra.gmra.mrb[10].mxu1 %vm181_vm2, %v1228_v62 }
0x1028   :  { %1882 = vmatmul.mubr.msk.f32.vlgmr.msra.gmra.mrb[10].mxu0 %vm181_vm2, %v1126_v63  ;;  %2122 = vmatpush3.bf16.msra.mxu1 %v2463_v59 }
0x1029   :  { %2115 = vmatpush1.bf16.msra.mxu0 %v2427_v24  ;;  %2123 = vmatprep.subr.bf16.mxu1 %v2314_v58 }
0x102a   :  { %2117 = vmatprep.subr.bf16.mxu0 %v2429_v25  ;;  %2009 = vmatprep.mubr.msk.f32.mxu1 %vm2315_vm3, %v2311_v23 }
0x102b   :  { %1402 = vmatprep.mubr.f32.mxu0 %v2311_v23 }
0x102c   :  { %2125 = vmatpush3.bf16.msra.mxu1 %v2468_v61 }
0x102d   :  { %2119 = vmatpush1.bf16.msra.mxu0 %v2440_v28  ;;  %2134 = vmatprep.subr.bf16.mxu1 %v2314_v58 }
0x102e   :  { %2127 = vmatprep.subr.bf16.mxu0 %v2414_v19 }
0x10fa   :  { %v1297_v0 = vpop.f32.mrb[10].mxu1 }
0x10fb   :  { %v1195_v1 = vpop.f32.mrb[10].mxu0  ;;  %v2000_v2 = vpop.f32.mrb[11].mxu1 }
0x10fc   :  { %v1302_v3 = vrot.slane %v1195_v1, 4  ;;  %v1197_v4 = vpop.f32.mrb[11].mxu0 }
0x10fd   :  { %v1409_v5 = vadd.f32 %v2455_v34, %v1197_v4 }
0x10fe   :  { %v1304_v7 = vadd.f32 %v1302_v3, %v2398_v6 }
0x10ff   :  { %v1410_v9 = vadd.f32 %v1409_v5, %v1297_v0 }
0x1100   :  { %2243 = vtanh.f32 %v1304_v7  ;;  %v1885_v12 = vmul.f32 -1.442695, %v1304_v7 }
0x1101   :  { %2245 = vtanh.f32 %v1410_v9  ;;  %v1887_v19 = vmul.f32 -1.442695, %v1410_v9 }
0x1102   :  { %2247 = vpow2.f32 %v1885_v12 }
0x1103   :  { %2249 = vpow2.f32 %v1887_v19 }
0x110a   :  { %v2244_v10 = vpop.eup %2243 }
0x110b   :  { %v2246_v11 = vpop.eup %2245  ;;  %1317 = vrot.lane.b32.xlu0 %v2244_v10, %s2310_s1 }
0x110c   :  { %1420 = vrot.lane.b32.xlu1 %v2246_v11, %s2310_s1  ;;  %v2248_v13 = vpop.eup %2247 }
0x110d   :  { %v2250_v8 = vpop.eup %2249  ;;  %v1308_v14 = vadd.f32 1.0, %v2248_v13 }
0x110e   :  { %v1414_v15 = vadd.f32 1.0, %v2250_v8 }
0x110f   :  { %2251 = vrcp.f32 %v1308_v14 }
0x1110   :  { %2253 = vrcp.f32 %v1414_v15 }
0x1119   :  { %v2252_v16 = vpop.eup %2251 }
0x111a   :  { %v2254_v18 = vpop.eup %2253  ;;  %v1315_v27 = vmul.f32 %v2252_v16, %v1313_v26 }
0x111b   :  { %v1418_v30 = vmul.f32 %v2254_v18, %v2584_v51 }
0x117d   :  { %v1318_v17 = vpop.permute.xlu0 %1317 }
0x117e   :  { %v1320_v20 = vmul.f32 %v2252_v16, %v1318_v17  ;;  %v1421_v21 = vpop.permute.xlu1 %1420 }
0x117f   :  { %v1423_v22 = vmul.f32 %v2254_v18, %v1421_v21 }
0x1180   :  { %1322 = vrot.lane.b32.xlu0 %v1320_v20, %s2313_s28 }
0x1181   :  { %1425 = vrot.lane.b32.xlu1 %v1423_v22, %s2313_s28 }
0x11f2   :  { %v1323_v29 = vpop.permute.xlu0 %1322 }
0x11f3   :  { %v2613_v31 = vadd.f32 %v1323_v29, %v1315_v27  ;;  %v1426_v32 = vpop.permute.xlu1 %1425 }
0x11f4   :  { %v1428_v33 = vadd.f32 %v1426_v32, %v1418_v30 }
0x11f5   :  { %2255 = vtanh.f32 %v2613_v31  ;;  %v1522_v63 = vrot.slane %v2613_v31, 6 }
0x11f6   :  { %2257 = vtanh.f32 %v1428_v33 }
0x11ff   :  { %v2256_v35 = vpop.eup %2255 }
0x1200   :  { %v2258_v36 = vpop.eup %2257  ;;  %1328 = vrot.lane.b32.xlu0 %v2256_v35, %s2310_s1 }
0x1201   :  { %1431 = vrot.lane.b32.xlu1 %v2258_v36, %s2310_s1  ;;  %v1745_v36 = vld [vmem:[%s2681_s6 + $0x8] sm:$0xff] }
0x1272   :  { %v1329_v37 = vpop.permute.xlu0 %1328 }
0x1273   :  { %v1331_v38 = vmul.f32 %v2252_v16, %v1329_v37  ;;  %v1432_v39 = vpop.permute.xlu1 %1431  ;;  %v1746_v37 = vld [vmem:[%s2681_s6 + $0x10] sm:$0xff] }
0x1274   :  { %v1434_v40 = vmul.f32 %v2254_v18, %v1432_v39  ;;  %v1747_v39 = vld [vmem:[%s2681_s6 + $0x18] sm:$0xff] }
0x1275   :  { %v1333_v41 = vrot.slane %v1331_v38, 4 }
0x1276   :  { %1436 = vrot.lane.b32.xlu1 %v1434_v40, %s2313_s28  ;;  %v2144_v40 = vpack.c.bf16 %v1747_v39, %v1746_v37 }
0x1277   :  { %1334 = vrot.lane.b32.xlu0 %v1333_v41, %s2313_s28 }
0x12e8   :  { %v1437_v42 = vpop.permute.xlu1 %1436 }
0x12e9   :  { %v1335_v43 = vpop.permute.xlu0 %1334  ;;  %2010 = vmatmul.mubr.msk.f32.vlgmr.msra.gmra.mrb[12].mxu1 %vm181_vm2, %v1437_v42 }
0x12ea   :  { %1886 = vmatmul.mubr.msk.f32.vlgmr.msra.gmra.mrb[12].mxu0 %vm181_vm2, %v1335_v43  ;;  %2136 = vmatpush3.bf16.msra.mxu1 %v2463_v59 }
0x12eb   :  { %2129 = vmatpush1.bf16.msra.mxu0 %v2427_v24  ;;  %2137 = vmatprep.subr.bf16.mxu1 %v2314_v58 }
0x12ec   :  { %2131 = vmatprep.subr.bf16.mxu0 %v2429_v25  ;;  %2020 = vmatprep.mubr.msk.f32.mxu1 %vm2315_vm3, %v2311_v23 }
0x12ed   :  { %1611 = vmatprep.mubr.f32.mxu0 %v2311_v23 }
0x12ee   :  { %2139 = vmatpush3.bf16.msra.mxu1 %v2468_v61 }
0x12ef   :  { %2133 = vmatpush1.bf16.msra.mxu0 %v2440_v28 }
0x12f0   :  { %2140 = vmatprep.subr.bf16.mxu0 %v2314_v58 }
0x13bc   :  { %v1506_v44 = vpop.f32.mrb[12].mxu1 }
0x13bd   :  { %v1404_v45 = vpop.f32.mrb[12].mxu0  ;;  %v2011_v59 = vpop.f32.mrb[13].mxu1 }
0x13be   :  { %v1511_v46 = vrot.slane %v1404_v45, 2  ;;  %v1406_v24 = vpop.f32.mrb[13].mxu0  ;;  %v1894_v45 = vld [vmem:[%s2682_s7] ss:$0 sm:$0xff] }
0x13bf   :  { %v1617_v47 = vadd.f32 %v2455_v34, %v1406_v24 }
0x13c0   :  { %v1513_v25 = vadd.f32 %v1511_v46, %v2398_v6 }
0x13c1   :  { %v1618_v48 = vadd.f32 %v1617_v47, %v1506_v44 }
0x13c2   :  { %2259 = vtanh.f32 %v1513_v25  ;;  %v1889_v28 = vmul.f32 -1.442695, %v1513_v25 }
0x13c3   :  { %2261 = vtanh.f32 %v1618_v48  ;;  %v1891_v61 = vmul.f32 -1.442695, %v1618_v48 }
0x13c4   :  { %2263 = vpow2.f32 %v1889_v28 }
0x13c5   :  { %2265 = vpow2.f32 %v1891_v61 }
0x13cc   :  { %v2260_v49 = vpop.eup %2259 }
0x13cd   :  { %v2262_v50 = vpop.eup %2261  ;;  %1526 = vrot.lane.b32.xlu0 %v2260_v49, %s2310_s1  ;;  %v1897_v49 = vld [vmem:[#allocation2] ss:$0 sm:$0xff] }
0x13ce   :  { %1628 = vrot.lane.b32.xlu1 %v2262_v50, %s2310_s1  ;;  %v2264_v51 = vpop.eup %2263 }
0x13cf   :  { %v2266_v52 = vpop.eup %2265  ;;  %v1517_v53 = vadd.f32 1.0, %v2264_v51 }
0x13d0   :  { %v1622_v54 = vadd.f32 1.0, %v2266_v52 }
0x13d1   :  { %2267 = vrcp.f32 %v1517_v53 }
0x13d2   :  { %2269 = vrcp.f32 %v1622_v54 }
0x13db   :  { %v2268_v6 = vpop.eup %2267 }
0x13dc   :  { %v2270_v56 = vpop.eup %2269  ;;  %v1524_v0 = vmul.f32 %v2268_v6, %v1522_v63 }
0x13dd   :  { %v1626_v2 = vmul.f32 %v2270_v56, %v1428_v33 }
0x143f   :  { %v1527_v55 = vpop.permute.xlu0 %1526 }
0x1440   :  { %v1529_v57 = vmul.f32 %v2268_v6, %v1527_v55  ;;  %v1629_v60 = vpop.permute.xlu1 %1628 }
0x1441   :  { %v1631_v62 = vmul.f32 %v2270_v56, %v1629_v60 }
0x1442   :  { %1531 = vrot.lane.b32.xlu0 %v1529_v57, %s2313_s28 }
0x1443   :  { %1633 = vrot.lane.b32.xlu1 %v1631_v62, %s2313_s28 }
0x14b4   :  { %v1532_v1 = vpop.permute.xlu0 %1531 }
0x14b5   :  { %v1534_v3 = vadd.f32 %v1532_v1, %v1524_v0  ;;  %v1634_v4 = vpop.permute.xlu1 %1633 }
0x14b6   :  { %v1636_v5 = vadd.f32 %v1634_v4, %v1626_v2 }
0x14b7   :  { %2271 = vtanh.f32 %v1534_v3 }
0x14b8   :  { %2273 = vtanh.f32 %v1636_v5 }
0x14c1   :  { %v2272_v7 = vpop.eup %2271 }
0x14c2   :  { %v2274_v9 = vpop.eup %2273  ;;  %1537 = vrot.lane.b32.xlu0 %v2272_v7, %s2310_s1 }
0x14c3   :  { %1639 = vrot.lane.b32.xlu1 %v2274_v9, %s2310_s1 }
0x1534   :  { %v1538_v10 = vpop.permute.xlu0 %1537 }
0x1535   :  { %v1540_v11 = vmul.f32 %v2268_v6, %v1538_v10  ;;  %v1640_v12 = vpop.permute.xlu1 %1639 }
0x1536   :  { %v1642_v19 = vmul.f32 %v2270_v56, %v1640_v12 }
0x1537   :  { %v1542_v13 = vrot.slane %v1540_v11, 6 }
0x1538   :  { %1644 = vrot.lane.b32.xlu1 %v1642_v19, %s2313_s28 }
0x1539   :  { %1543 = vrot.lane.b32.xlu0 %v1542_v13, %s2313_s28 }
0x15aa   :  { %v1645_v8 = vpop.permute.xlu1 %1644 }
0x15ab   :  { %v1544_v14 = vpop.permute.xlu0 %1543  ;;  %2021 = vmatmul.mubr.msk.f32.vlgmr.msra.gmra.mrb[14].mxu1 %vm181_vm2, %v1645_v8 }
0x15ac   :  { %1890 = vmatmul.mubr.msk.f32.vlgmr.msra.gmra.mrb[14].mxu0 %vm181_vm2, %v1544_v14 }
0x15ad   :  { %2031 = vmatprep.mubr.msk.f32.mxu0 %vm2315_vm3, %v2311_v23 }
0x167e   :  { %v1714_v15 = vpop.f32.mrb[14].mxu1 }
0x167f   :  { %v1613_v16 = vpop.f32.mrb[14].mxu0  ;;  %v2022_v17 = vpop.f32.mrb[15].mxu1 }
0x1680   :  { %v1614_v18 = vpop.f32.mrb[15].mxu0 }
0x1681   :  { %v1718_v20 = vadd.f32 %v2455_v34, %v1614_v18  ;;  %v1744_v34 = vld [vmem:[%s2681_s6] sm:$0xff] }
0x1682   :  { %v2141_v38 = vpack.c.bf16 %v1745_v36, %v1744_v34 }
0x1683   :  { %v1719_v21 = vadd.f32 %v1718_v20, %v1714_v15 }
0x1684   :  { %2142 = vmatpush3.bf16.msra.mxu0 %v2141_v38 }
0x1685   :  { %2275 = vtanh.f32 %v1719_v21  ;;  %v1893_v26 = vmul.f32 -1.442695, %v1719_v21  ;;  %2143 = vmatprep.subr.bf16.mxu0 %v2314_v58  ;;  %v1896_v58 = vld [vmem:[%s2683_s8] ss:$0 sm:$0xff] }
0x1687   :  { %2277 = vpow2.f32 %v1893_v26 }
0x1688   :  { %2145 = vmatpush3.bf16.msra.mxu0 %v2144_v40 }
0x168f   :  { %v2276_v22 = vpop.eup %2275 }
0x1690   :  { %1729 = vrot.lane.b32.xlu0 %v2276_v22, %s2310_s1 }
0x1691   :  { %v2278_v27 = vpop.eup %2277 }
0x1692   :  { %v1723_v29 = vadd.f32 1.0, %v2278_v27 }
0x1694   :  { %2279 = vrcp.f32 %v1723_v29 }
0x169e   :  { %v2280_v30 = vpop.eup %2279 }
0x169f   :  { %v1727_v23 = vmul.f32 %v2280_v30, %v1636_v5 }
0x1702   :  { %v1730_v31 = vpop.permute.xlu0 %1729 }
0x1703   :  { %v1732_v32 = vmul.f32 %v2280_v30, %v1730_v31 }
0x1705   :  { %1734 = vrot.lane.b32.xlu1 %v1732_v32, %s2313_s28 }
0x1777   :  { %v1735_v33 = vpop.permute.xlu1 %1734 }
0x1778   :  { %v1737_v35 = vadd.f32 %v1735_v33, %v1727_v23 }
0x177a   :  { %2281 = vtanh.f32 %v1737_v35 }
0x1784   :  { %v2282_v41 = vpop.eup %2281 }
0x1785   :  { %1740 = vrot.lane.b32.xlu0 %v2282_v41, %s2310_s1 }
0x17f7   :  { %v1741_v42 = vpop.permute.xlu0 %1740 }
0x17f8   :  { %v1743_v43 = vmul.f32 %v2280_v30, %v1741_v42 }
0x17fa   :  { %1756 = vrot.lane.b32.xlu1 %v1743_v43, %s2313_s28 }
0x186c   :  { %v1757_v44 = vpop.permute.xlu1 %1756 }
0x186d   :  { %2032 = vmatmul.mubr.msk.f32.vlgmr.msra.gmra.mrb[16].mxu0 %vm181_vm2, %v1757_v44 }
0x1940   :  { %v1826_v59 = vpop.f32.mrb[16].mxu0 }
0x1941   :  { %v1827_v46 = vadd.f32 %v1894_v45, %v1826_v59  ;;  %v2033_v24 = vpop.f32.mrb[17].mxu0 }
0x1943   :  { %v1830_v47 = vmax.f32 %v1827_v46, 0.0 }
0x1945   :  { %v1838_v25 = vmul.f32 %v1896_v58, %v1830_v47 }
0x1947   :  { %v1840_v48 = vsel %vm1839_vm4, %v1838_v25, 0.0 }
0x1948   :  { %1841 = vadd.xlane.f32.xlu0 %v1840_v48 }
0x19d5   :  { %v1842_v50 = vpop.xlane.xlu0 %1841 }
0x19d6   :  { %v1850_v28 = vadd.f32 %v1897_v49, %v1842_v50 }
0x19d8   :  { %1852 = vst.msk [vmem:[%s2685_s10] sm:$0x3] %vm1851_vm5, %v1850_v28 }
0x19d9   :  { %1857 = vsyncpa [#allocation4], 1 }

</bundles_post_ra>
